<compile_context>
chip_gen: v7x
topology: tpu7x:2x2x1
jax: 0.10.0
libtpu: 0.0.40
codegen_flags: <defaults>
</compile_context>

<pallas_src>
import math
import functools

import jax
import jax.numpy as jnp
from jax import lax
from jax.experimental import pallas as pl
from jax.experimental.pallas import tpu as pltpu

# Small, module-consistent demo shapes (dim divisible by nhead, head_dim even).
DIM = 64
NHEAD = 4
HEAD_DIM = DIM // NHEAD
SEQ = 8
BATCH = 2
OUT_DIM = 32
LN_EPS = 1e-12  # ESM1LayerNorm default eps


# ----------------------------- packed-parameter layout ----------------------
def _offsets(dim, seq, kv):
    """Row offsets inside the packed parameter stacks (all multiples of 8)."""
    C, N, KV = dim, seq, kv
    o = {}
    r = 0
    for name, rows in (("cosq", N), ("sinAq", N), ("sinBq", N),
                       ("cosk", KV), ("sinAk", KV), ("sinBk", KV),
                       ("ktail", KV - N), ("vtail", KV - N),
                       ("wo", C), ("w2", 2 * C), ("rowvec", 8)):
        o[name] = r
        r += rows
    o["s64_rows"] = r
    r = 0
    for name, rows in (("w1", C), ("b1", 8), ("wf", C), ("bf", 8)):
        o[name] = r
        r += rows
    o["s128_rows"] = r
    return o


# row-vector slots inside the "rowvec" block of the C-wide stack
_RV_G1, _RV_BT1, _RV_G2, _RV_BT2, _RV_BO, _RV_B2 = 0, 1, 2, 3, 4, 5


# ----------------------------- kernel helpers ------------------------------
def _erf_approx(x):
    # Abramowitz & Stegun 7.1.26, |abs err| < 1.5e-7 (Mosaic has no native erf).
    a1, a2, a3, a4, a5 = 0.254829592, -0.284496736, 1.421413741, -1.453152027, 1.061405429
    p = 0.3275911
    ax = jnp.abs(x)
    t = 1.0 / (1.0 + p * ax)
    poly = ((((a5 * t + a4) * t + a3) * t + a2) * t + a1) * t
    y = 1.0 - poly * jnp.exp(-ax * ax)
    return jnp.where(x < 0.0, -y, y)


def _layernorm(z, g, b):
    m = jnp.mean(z, axis=-1, keepdims=True)
    zc = z - m
    v = jnp.mean(zc * zc, axis=-1, keepdims=True)
    return zc * lax.rsqrt(v + LN_EPS) * g + b


# --------------------------------- kernel ----------------------------------
def decoder_block_kernel(x_ref, s64_ref, s128_ref, wqkvb_ref, out_ref, *,
                         dim, nhead, head_dim, seq_len, kv_len):
    f32 = jnp.float32
    C, H, hd, N, KV = dim, nhead, head_dim, seq_len, kv_len
    half = hd // 2
    o = _offsets(C, N, KV)
    rv = o["rowvec"]

    def row(ref, r):  # (1, width) row-vector read at a static offset
        return ref[r:r + 1, :]

    x = x_ref[0].astype(f32)                                    # (N, C)

    # --- self-attention sub-block (pre-LN) ---
    h = _layernorm(x, row(s64_ref, rv + _RV_G1), row(s64_ref, rv + _RV_BT1))

    # fused QKV projection; 1/sqrt(hd) scaling is pre-folded into the Q columns
    qkv = (jnp.dot(h, wqkvb_ref[0:C, :], preferred_element_type=f32)
           + wqkvb_ref[C:C + 1, :])                             # (N, 3C)
    q = qkv[:, 0 * C:1 * C]
    k = qkv[:, 1 * C:2 * C]
    v = qkv[:, 2 * C:3 * C]

    # add_bias_kv=True: bias_k / bias_v row appended, then zero-padded to an
    # 8-aligned KV length (padded columns masked before softmax).
    k = jnp.concatenate([k, s64_ref[o["ktail"]:o["ktail"] + KV - N, :]], axis=0)  # (KV, C)
    v = jnp.concatenate([v, s64_ref[o["vtail"]:o["vtail"] + KV - N, :]], axis=0)  # (KV, C)

    # rotary embedding applied full-width in one pass:
    #   rotate_half per head == select(roll_left(z, half), roll_right(z, half));
    #   the select mask and -1 sign are pre-folded into the sinA / sinB tables.
    def roll_l(z):
        return jnp.concatenate([z[:, half:], z[:, :half]], axis=1)

    def roll_r(z):
        w = z.shape[1]
        return jnp.concatenate([z[:, w - half:], z[:, :w - half]], axis=1)

    q = (q * s64_ref[o["cosq"]:o["cosq"] + N, :]
         + roll_l(q) * s64_ref[o["sinAq"]:o["sinAq"] + N, :]
         + roll_r(q) * s64_ref[o["sinBq"]:o["sinBq"] + N, :])
    k = (k * s64_ref[o["cosk"]:o["cosk"] + KV, :]
         + roll_l(k) * s64_ref[o["sinAk"]:o["sinAk"] + KV, :]
         + roll_r(k) * s64_ref[o["sinBk"]:o["sinBk"] + KV, :])

    # batched multi-head attention: two einsums instead of a per-head matmul loop
    qh = jnp.stack([q[:, hh * hd:(hh + 1) * hd] for hh in range(H)], axis=0)  # (H, N, hd)
    kh = jnp.stack([k[:, hh * hd:(hh + 1) * hd] for hh in range(H)], axis=0)  # (H, KV, hd)
    vh = jnp.stack([v[:, hh * hd:(hh + 1) * hd] for hh in range(H)], axis=0)  # (H, KV, hd)

    s = jnp.einsum("hqd,hkd->hqk", qh, kh, preferred_element_type=f32)        # (H, N, KV)
    col = lax.broadcasted_iota(jnp.int32, (1, 1, KV), 2)
    s = jnp.where(col < N + 1, s, -1e30)                        # mask padded KV columns
    s = s - jnp.max(s, axis=-1, keepdims=True)
    p = jnp.exp(s)
    p = p * pl.reciprocal(jnp.sum(p, axis=-1, keepdims=True), approx=True)
    attn = jnp.einsum("hqk,hkd->hqd", p, vh, preferred_element_type=f32)      # (H, N, hd)
    a = jnp.concatenate([attn[hh] for hh in range(H)], axis=-1)               # (N, C)

    a = (jnp.dot(a, s64_ref[o["wo"]:o["wo"] + C, :], preferred_element_type=f32)
         + row(s64_ref, rv + _RV_BO))
    x = x + a                                                   # residual

    # --- feed-forward sub-block (pre-LN) ---
    h = _layernorm(x, row(s64_ref, rv + _RV_G2), row(s64_ref, rv + _RV_BT2))
    h = (jnp.dot(h, s128_ref[o["w1"]:o["w1"] + C, :], preferred_element_type=f32)
         + row(s128_ref, o["b1"]))
    # exact-erf GELU via polynomial erf (no native erf in Mosaic)
    h = 0.5 * h * (1.0 + _erf_approx(h * (1.0 / math.sqrt(2.0))))
    h = (jnp.dot(h, s64_ref[o["w2"]:o["w2"] + 2 * C, :], preferred_element_type=f32)
         + row(s64_ref, rv + _RV_B2))
    x = x + h                                                   # residual

    # --- final head: pre-folded (wf1@wf2 / bf1@wf2+bf2), lane-dense padded output ---
    y = (jnp.dot(x, s128_ref[o["wf"]:o["wf"] + C, :], preferred_element_type=f32)
         + row(s128_ref, o["bf"]))
    out_ref[0] = y.astype(out_ref.dtype)


# ------------------------------- glue / wrapper ------------------------------
def rotary_tables(kv_len, head_dim):
    inv_freq = 1.0 / (10000.0 ** (jnp.arange(0, head_dim, 2, dtype=jnp.float32) / head_dim))
    t = jnp.arange(kv_len, dtype=jnp.float32)
    freqs = jnp.outer(t, inv_freq)
    emb = jnp.concatenate([freqs, freqs], axis=-1)              # (kv_len, head_dim)
    return jnp.cos(emb), jnp.sin(emb)


def init_params(key, dim=DIM, out_dim=OUT_DIM):
    ks = jax.random.split(key, 16)

    def w(k, shape, scale=0.05):
        return scale * jax.random.normal(k, shape, jnp.float32)

    p = {}
    p["g1"] = jnp.ones((1, dim), jnp.float32)
    p["bt1"] = jnp.zeros((1, dim), jnp.float32)
    p["wq"], p["bq"] = w(ks[0], (dim, dim)), w(ks[1], (1, dim))      # weights stored as (in, out)
    p["wk"], p["bk"] = w(ks[2], (dim, dim)), w(ks[3], (1, dim))
    p["wv"], p["bv"] = w(ks[4], (dim, dim)), w(ks[5], (1, dim))
    p["bias_k"], p["bias_v"] = w(ks[6], (1, dim)), w(ks[7], (1, dim))
    p["wo"], p["bo"] = w(ks[8], (dim, dim)), w(ks[9], (1, dim))
    p["g2"] = jnp.ones((1, dim), jnp.float32)
    p["bt2"] = jnp.zeros((1, dim), jnp.float32)
    p["w1"], p["b1"] = w(ks[10], (dim, 2 * dim)), w(ks[11], (1, 2 * dim))
    p["w2"], p["b2"] = w(ks[12], (2 * dim, dim)), w(ks[13], (1, dim))
    p["wf1"], p["bf1"] = w(ks[14], (dim, dim // 4)), jnp.zeros((1, dim // 4), jnp.float32)
    p["wf2"], p["bf2"] = w(ks[15], (dim // 4, out_dim)), jnp.zeros((1, out_dim), jnp.float32)
    return p


def pack_params(p, seq_len, kv_len, nhead=NHEAD):
    """Fold/fuse the module parameters into three packed kernel operands."""
    C = p["wq"].shape[0]
    hd = C // nhead
    assert seq_len % 8 == 0 and kv_len % 8 == 0 and kv_len >= seq_len + 1
    assert (hd & (hd - 1)) == 0 and OUT_DIM <= 2 * C
    o = _offsets(C, seq_len, kv_len)
    scaling = 1.0 / math.sqrt(hd)

    # (1) fused QKV weight/bias; attention scaling folded into the Q columns
    wqkv = jnp.concatenate([p["wq"] * scaling, p["wk"], p["wv"]], axis=1)     # (C, 3C)
    bqkv = jnp.concatenate([p["bq"] * scaling, p["bk"], p["bv"]], axis=1)     # (1, 3C)
    wqkvb = jnp.zeros((C + 8, 3 * C), jnp.float32)
    wqkvb = wqkvb.at[:C].set(wqkv).at[C].set(bqkv[0])

    # (2) full-width rotary tables with rotate-half select + sign pre-folded
    cos, sin = rotary_tables(kv_len, hd)                        # (KV, hd)
    firsthalf = (jnp.arange(C) % hd) < (hd // 2)                # (C,)
    cos_full = jnp.tile(cos, (1, nhead))                        # (KV, C)
    sin_full = jnp.tile(sin, (1, nhead))
    sinA = jnp.where(firsthalf[None, :], -sin_full, 0.0)        # pairs with roll-left
    sinB = jnp.where(firsthalf[None, :], 0.0, sin_full)         # pairs with roll-right

    tail = kv_len - seq_len
    ktail = jnp.zeros((tail, C), jnp.float32).at[0].set(p["bias_k"][0])
    vtail = jnp.zeros((tail, C), jnp.float32).at[0].set(p["bias_v"][0])

    s64 = jnp.zeros((o["s64_rows"], C), jnp.float32)
    s64 = (s64.at[o["cosq"]:o["cosq"] + seq_len].set(cos_full[:seq_len])
              .at[o["sinAq"]:o["sinAq"] + seq_len].set(sinA[:seq_len])
              .at[o["sinBq"]:o["sinBq"] + seq_len].set(sinB[:seq_len])
              .at[o["cosk"]:o["cosk"] + kv_len].set(cos_full)
              .at[o["sinAk"]:o["sinAk"] + kv_len].set(sinA)
              .at[o["sinBk"]:o["sinBk"] + kv_len].set(sinB)
              .at[o["ktail"]:o["ktail"] + tail].set(ktail)
              .at[o["vtail"]:o["vtail"] + tail].set(vtail)
              .at[o["wo"]:o["wo"] + C].set(p["wo"])
              .at[o["w2"]:o["w2"] + 2 * C].set(p["w2"])
              .at[o["rowvec"] + _RV_G1].set(p["g1"][0])
              .at[o["rowvec"] + _RV_BT1].set(p["bt1"][0])
              .at[o["rowvec"] + _RV_G2].set(p["g2"][0])
              .at[o["rowvec"] + _RV_BT2].set(p["bt2"][0])
              .at[o["rowvec"] + _RV_BO].set(p["bo"][0])
              .at[o["rowvec"] + _RV_B2].set(p["b2"][0]))

    # (3) FFN input weights + pre-folded final head (Dropout=id => single affine),
    #     padded to a lane-dense 2C (=128) output width.
    wf = p["wf1"] @ p["wf2"]                                    # (C, OUT_DIM)
    bf = p["bf1"] @ p["wf2"] + p["bf2"]                         # (1, OUT_DIM)
    s128 = jnp.zeros((o["s128_rows"], 2 * C), jnp.float32)
    s128 = (s128.at[o["w1"]:o["w1"] + C].set(p["w1"])
                .at[o["b1"]].set(p["b1"][0])
                .at[o["wf"]:o["wf"] + C, :OUT_DIM].set(wf)
                .at[o["bf"], :OUT_DIM].set(bf[0]))
    return s64, s128, wqkvb


def decoder_block(x, params):
    """x: (seq, batch, dim) float32  ->  (seq, batch, 32) float32."""
    N, B, C = x.shape
    hd = C // NHEAD
    kv = ((N + 1 + 7) // 8) * 8                                 # 8-aligned KV length
    out_pad = 2 * C                                             # lane-dense output width
    xb = jnp.transpose(x, (1, 0, 2))                            # (B, N, C)
    s64, s128, wqkvb = pack_params(params, N, kv)

    flops_per_b = (2 * N * C * (3 * C + C + 2 * C + 2 * C + out_pad)
                   + 2 * NHEAD * N * kv * 2 * hd)
    ce = pl.CostEstimate(
        flops=B * flops_per_b,
        transcendentals=B * (NHEAD * N * kv + N * 2 * C),
        bytes_accessed=4 * (xb.size + s64.size + s128.size + wqkvb.size + B * N * out_pad))

    out = pl.pallas_call(
        functools.partial(decoder_block_kernel, dim=C, nhead=NHEAD, head_dim=hd,
                          seq_len=N, kv_len=kv),
        out_shape=jax.ShapeDtypeStruct((B, N, out_pad), jnp.float32),
        grid=(B,),
        in_specs=[pl.BlockSpec((1, N, C), lambda b: (b, 0, 0)),
                  pl.BlockSpec(s64.shape, lambda b: (0, 0)),
                  pl.BlockSpec(s128.shape, lambda b: (0, 0)),
                  pl.BlockSpec(wqkvb.shape, lambda b: (0, 0))],
        out_specs=pl.BlockSpec((1, N, out_pad), lambda b: (b, 0, 0)),
        compiler_params=pltpu.CompilerParams(dimension_semantics=("parallel",)),
        cost_estimate=ce,
    )(xb, s64, s128, wqkvb)
    return jnp.transpose(out[..., :OUT_DIM], (1, 0, 2))         # (N, B, 32)


# ------------------------------ pure-JAX reference ---------------------------
def reference(x, p):
    N, B, C = x.shape
    hd = C // NHEAD

    def ln(z, g, b):
        m = z.mean(-1, keepdims=True)
        zc = z - m
        v = (zc * zc).mean(-1, keepdims=True)
        return zc / jnp.sqrt(v + LN_EPS) * g + b

    def rot_half(z):
        h = z.shape[-1] // 2
        return jnp.concatenate([-z[..., h:], z[..., :h]], axis=-1)

    h = ln(x, p["g1"][0], p["bt1"][0])
    scaling = hd ** -0.5
    q = (h @ p["wq"] + p["bq"][0]) * scaling
    k = h @ p["wk"] + p["bk"][0]
    v = h @ p["wv"] + p["bv"][0]
    k = jnp.concatenate([k, jnp.broadcast_to(p["bias_k"][None], (1, B, C))], axis=0)
    v = jnp.concatenate([v, jnp.broadcast_to(p["bias_v"][None], (1, B, C))], axis=0)
    qh = q.reshape(N, B * NHEAD, hd).transpose(1, 0, 2)
    kh = k.reshape(N + 1, B * NHEAD, hd).transpose(1, 0, 2)
    vh = v.reshape(N + 1, B * NHEAD, hd).transpose(1, 0, 2)
    cos, sin = rotary_tables(N + 1, hd)
    qh = qh * cos[:N] + rot_half(qh) * sin[:N]
    kh = kh * cos + rot_half(kh) * sin
    s = jnp.einsum("bqd,bkd->bqk", qh, kh)
    pr = jax.nn.softmax(s, axis=-1)
    a = jnp.einsum("bqk,bkd->bqd", pr, vh)
    a = a.transpose(1, 0, 2).reshape(N, B, C)
    a = a @ p["wo"] + p["bo"][0]
    x = x + a
    h = ln(x, p["g2"][0], p["bt2"][0])
    h = h @ p["w1"] + p["b1"][0]
    h = 0.5 * h * (1.0 + lax.erf(h / jnp.sqrt(2.0)))
    h = h @ p["w2"] + p["b2"][0]
    x = x + h
    y = x @ p["wf1"] + p["bf1"][0]
    y = y @ p["wf2"] + p["bf2"][0]
    return y


if __name__ == "__main__":
    import numpy as np

    key = jax.random.PRNGKey(0)
    kx, kp = jax.random.split(key)
    x = jax.random.normal(kx, (SEQ, BATCH, DIM), jnp.float32)   # (seq, batch, dim)
    params = init_params(kp)

    y = decoder_block(x, params)
    y = jax.block_until_ready(y)
    assert y.shape == (SEQ, BATCH, OUT_DIM)

    y_ref = reference(x, params)
    np.testing.assert_allclose(np.asarray(y), np.asarray(y_ref), rtol=2e-2, atol=2e-2)
    print("KERNEL_OK")
</pallas_src>

<mosaic_0001>
module attributes {stable_mosaic.version = 11 : i64} {
  func.func @decoder_block_kernel(%arg0: i32, %arg1: memref<1x8x64xf32, #tpu.memory_space<vmem>>, %arg2: memref<288x64xf32, #tpu.memory_space<vmem>>, %arg3: memref<144x128xf32, #tpu.memory_space<vmem>>, %arg4: memref<72x192xf32, #tpu.memory_space<vmem>>, %arg5: memref<1x8x128xf32, #tpu.memory_space<vmem>>) attributes {dimension_semantics = [#tpu.dimension_semantics<parallel>], iteration_bounds = array<i64: 2>, scalar_prefetch = 0 : i64, scratch_operands = 0 : i64, tpu.core_type = #tpu.core_type<tc>, window_params = [{transform_indices = @transform_0, window_bounds = array<i64: 1, 8, 64>}, {pipeline_mode = #tpu.pipeline_mode<synchronous>, transform_indices = @transform_1, window_bounds = array<i64: 288, 64>}, {pipeline_mode = #tpu.pipeline_mode<synchronous>, transform_indices = @transform_2, window_bounds = array<i64: 144, 128>}, {pipeline_mode = #tpu.pipeline_mode<synchronous>, transform_indices = @transform_3, window_bounds = array<i64: 72, 192>}, {transform_indices = @transform_4, window_bounds = array<i64: 1, 8, 128>}]} {
    %c0 = arith.constant 0 : index
    %c0_0 = arith.constant 0 : index
    %c0_1 = arith.constant 0 : index
    %0 = vector.load %arg1[%c0, %c0_0, %c0_1] : memref<1x8x64xf32, #tpu.memory_space<vmem>>, vector<1x8x64xf32>
    %1 = vector.shape_cast %0 : vector<1x8x64xf32> to vector<8x64xf32>
    %c280 = arith.constant 280 : index
    %c0_2 = arith.constant 0 : index
    %2 = vector.load %arg2[%c280, %c0_2] : memref<288x64xf32, #tpu.memory_space<vmem>>, vector<1x64xf32>
    %c281 = arith.constant 281 : index
    %c0_3 = arith.constant 0 : index
    %3 = vector.load %arg2[%c281, %c0_3] : memref<288x64xf32, #tpu.memory_space<vmem>>, vector<1x64xf32>
    %cst = arith.constant dense<0.000000e+00> : vector<8xf32>
    %4 = vector.multi_reduction <add>, %1, %cst [1] : vector<8x64xf32> to vector<8xf32>
    %5 = vector.shape_cast %4 : vector<8xf32> to vector<8x1xf32>
    %cst_4 = arith.constant 6.400000e+01 : f32
    %6 = vector.broadcast %cst_4 : f32 to vector<8x1xf32>
    %7 = arith.divf %5, %6 : vector<8x1xf32>
    %8 = vector.broadcast %7 : vector<8x1xf32> to vector<8x64xf32>
    %9 = arith.subf %1, %8 : vector<8x64xf32>
    %10 = arith.mulf %9, %9 : vector<8x64xf32>
    %cst_5 = arith.constant dense<0.000000e+00> : vector<8xf32>
    %11 = vector.multi_reduction <add>, %10, %cst_5 [1] : vector<8x64xf32> to vector<8xf32>
    %12 = vector.shape_cast %11 : vector<8xf32> to vector<8x1xf32>
    %cst_6 = arith.constant 6.400000e+01 : f32
    %13 = vector.broadcast %cst_6 : f32 to vector<8x1xf32>
    %14 = arith.divf %12, %13 : vector<8x1xf32>
    %cst_7 = arith.constant 9.99999996E-13 : f32
    %15 = vector.broadcast %cst_7 : f32 to vector<8x1xf32>
    %16 = arith.addf %14, %15 : vector<8x1xf32>
    %17 = math.rsqrt %16 : vector<8x1xf32>
    %18 = vector.broadcast %17 : vector<8x1xf32> to vector<8x64xf32>
    %19 = arith.mulf %9, %18 : vector<8x64xf32>
    %20 = vector.broadcast %2 : vector<1x64xf32> to vector<8x64xf32>
    %21 = arith.mulf %19, %20 : vector<8x64xf32>
    %22 = vector.broadcast %3 : vector<1x64xf32> to vector<8x64xf32>
    %23 = arith.addf %21, %22 : vector<8x64xf32>
    %c0_8 = arith.constant 0 : index
    %c0_9 = arith.constant 0 : index
    %24 = vector.load %arg4[%c0_8, %c0_9] : memref<72x192xf32, #tpu.memory_space<vmem>>, vector<64x192xf32>
    %cst_10 = arith.constant dense<0.000000e+00> : vector<8x192xf32>
    %25 = tpu.matmul %23, %24, %cst_10 {dimension_numbers = #tpu.dot_dimension_numbers<[1], [0], [0], [1], [0, 0, 1, 1], [], []>} : vector<8x64xf32>, vector<64x192xf32>, vector<8x192xf32> -> vector<8x192xf32>
    %c64 = arith.constant 64 : index
    %c0_11 = arith.constant 0 : index
    %26 = vector.load %arg4[%c64, %c0_11] : memref<72x192xf32, #tpu.memory_space<vmem>>, vector<1x192xf32>
    %27 = vector.broadcast %26 : vector<1x192xf32> to vector<8x192xf32>
    %28 = arith.addf %25, %27 : vector<8x192xf32>
    %29 = vector.extract_strided_slice %28 {offsets = [0, 0], sizes = [8, 64], strides = [1, 1]} : vector<8x192xf32> to vector<8x64xf32>
    %30 = vector.extract_strided_slice %28 {offsets = [0, 64], sizes = [8, 64], strides = [1, 1]} : vector<8x192xf32> to vector<8x64xf32>
    %31 = vector.extract_strided_slice %28 {offsets = [0, 128], sizes = [8, 64], strides = [1, 1]} : vector<8x192xf32> to vector<8x64xf32>
    %c72 = arith.constant 72 : index
    %c0_12 = arith.constant 0 : index
    %32 = vector.load %arg2[%c72, %c0_12] : memref<288x64xf32, #tpu.memory_space<vmem>>, vector<8x64xf32>
    %33 = tpu.concatenate %30, %32 in 0 : vector<8x64xf32>, vector<8x64xf32> -> vector<16x64xf32>
    %c80 = arith.constant 80 : index
    %c0_13 = arith.constant 0 : index
    %34 = vector.load %arg2[%c80, %c0_13] : memref<288x64xf32, #tpu.memory_space<vmem>>, vector<8x64xf32>
    %35 = tpu.concatenate %31, %34 in 0 : vector<8x64xf32>, vector<8x64xf32> -> vector<16x64xf32>
    %c0_14 = arith.constant 0 : index
    %c0_15 = arith.constant 0 : index
    %36 = vector.load %arg2[%c0_14, %c0_15] : memref<288x64xf32, #tpu.memory_space<vmem>>, vector<8x64xf32>
    %37 = arith.mulf %29, %36 : vector<8x64xf32>
    %38 = vector.extract_strided_slice %29 {offsets = [0, 8], sizes = [8, 56], strides = [1, 1]} : vector<8x64xf32> to vector<8x56xf32>
    %39 = vector.extract_strided_slice %29 {offsets = [0, 0], sizes = [8, 8], strides = [1, 1]} : vector<8x64xf32> to vector<8x8xf32>
    %40 = tpu.concatenate %38, %39 in 1 : vector<8x56xf32>, vector<8x8xf32> -> vector<8x64xf32>
    %c8 = arith.constant 8 : index
    %c0_16 = arith.constant 0 : index
    %41 = vector.load %arg2[%c8, %c0_16] : memref<288x64xf32, #tpu.memory_space<vmem>>, vector<8x64xf32>
    %42 = arith.mulf %40, %41 : vector<8x64xf32>
    %43 = arith.addf %37, %42 : vector<8x64xf32>
    %44 = vector.extract_strided_slice %29 {offsets = [0, 56], sizes = [8, 8], strides = [1, 1]} : vector<8x64xf32> to vector<8x8xf32>
    %45 = vector.extract_strided_slice %29 {offsets = [0, 0], sizes = [8, 56], strides = [1, 1]} : vector<8x64xf32> to vector<8x56xf32>
    %46 = tpu.concatenate %44, %45 in 1 : vector<8x8xf32>, vector<8x56xf32> -> vector<8x64xf32>
    %c16 = arith.constant 16 : index
    %c0_17 = arith.constant 0 : index
    %47 = vector.load %arg2[%c16, %c0_17] : memref<288x64xf32, #tpu.memory_space<vmem>>, vector<8x64xf32>
    %48 = arith.mulf %46, %47 : vector<8x64xf32>
    %49 = arith.addf %43, %48 : vector<8x64xf32>
    %c24 = arith.constant 24 : index
    %c0_18 = arith.constant 0 : index
    %50 = vector.load %arg2[%c24, %c0_18] : memref<288x64xf32, #tpu.memory_space<vmem>>, vector<16x64xf32>
    %51 = arith.mulf %33, %50 : vector<16x64xf32>
    %52 = vector.extract_strided_slice %33 {offsets = [0, 8], sizes = [16, 56], strides = [1, 1]} : vector<16x64xf32> to vector<16x56xf32>
    %53 = vector.extract_strided_slice %33 {offsets = [0, 0], sizes = [16, 8], strides = [1, 1]} : vector<16x64xf32> to vector<16x8xf32>
    %54 = tpu.concatenate %52, %53 in 1 : vector<16x56xf32>, vector<16x8xf32> -> vector<16x64xf32>
    %c40 = arith.constant 40 : index
    %c0_19 = arith.constant 0 : index
    %55 = vector.load %arg2[%c40, %c0_19] : memref<288x64xf32, #tpu.memory_space<vmem>>, vector<16x64xf32>
    %56 = arith.mulf %54, %55 : vector<16x64xf32>
    %57 = arith.addf %51, %56 : vector<16x64xf32>
    %58 = vector.extract_strided_slice %33 {offsets = [0, 56], sizes = [16, 8], strides = [1, 1]} : vector<16x64xf32> to vector<16x8xf32>
    %59 = vector.extract_strided_slice %33 {offsets = [0, 0], sizes = [16, 56], strides = [1, 1]} : vector<16x64xf32> to vector<16x56xf32>
    %60 = tpu.concatenate %58, %59 in 1 : vector<16x8xf32>, vector<16x56xf32> -> vector<16x64xf32>
    %c56 = arith.constant 56 : index
    %c0_20 = arith.constant 0 : index
    %61 = vector.load %arg2[%c56, %c0_20] : memref<288x64xf32, #tpu.memory_space<vmem>>, vector<16x64xf32>
    %62 = arith.mulf %60, %61 : vector<16x64xf32>
    %63 = arith.addf %57, %62 : vector<16x64xf32>
    %64 = vector.extract_strided_slice %49 {offsets = [0, 0], sizes = [8, 16], strides = [1, 1]} : vector<8x64xf32> to vector<8x16xf32>
    %65 = vector.extract_strided_slice %49 {offsets = [0, 16], sizes = [8, 16], strides = [1, 1]} : vector<8x64xf32> to vector<8x16xf32>
    %66 = vector.extract_strided_slice %49 {offsets = [0, 32], sizes = [8, 16], strides = [1, 1]} : vector<8x64xf32> to vector<8x16xf32>
    %67 = vector.extract_strided_slice %49 {offsets = [0, 48], sizes = [8, 16], strides = [1, 1]} : vector<8x64xf32> to vector<8x16xf32>
    %68 = vector.shape_cast %64 : vector<8x16xf32> to vector<1x8x16xf32>
    %69 = vector.shape_cast %65 : vector<8x16xf32> to vector<1x8x16xf32>
    %70 = vector.shape_cast %66 : vector<8x16xf32> to vector<1x8x16xf32>
    %71 = vector.shape_cast %67 : vector<8x16xf32> to vector<1x8x16xf32>
    %72 = tpu.concatenate %68, %69, %70, %71 in 0 : vector<1x8x16xf32>, vector<1x8x16xf32>, vector<1x8x16xf32>, vector<1x8x16xf32> -> vector<4x8x16xf32>
    %73 = vector.extract_strided_slice %63 {offsets = [0, 0], sizes = [16, 16], strides = [1, 1]} : vector<16x64xf32> to vector<16x16xf32>
    %74 = vector.extract_strided_slice %63 {offsets = [0, 16], sizes = [16, 16], strides = [1, 1]} : vector<16x64xf32> to vector<16x16xf32>
    %75 = vector.extract_strided_slice %63 {offsets = [0, 32], sizes = [16, 16], strides = [1, 1]} : vector<16x64xf32> to vector<16x16xf32>
    %76 = vector.extract_strided_slice %63 {offsets = [0, 48], sizes = [16, 16], strides = [1, 1]} : vector<16x64xf32> to vector<16x16xf32>
    %77 = vector.shape_cast %73 : vector<16x16xf32> to vector<1x16x16xf32>
    %78 = vector.shape_cast %74 : vector<16x16xf32> to vector<1x16x16xf32>
    %79 = vector.shape_cast %75 : vector<16x16xf32> to vector<1x16x16xf32>
    %80 = vector.shape_cast %76 : vector<16x16xf32> to vector<1x16x16xf32>
    %81 = tpu.concatenate %77, %78, %79, %80 in 0 : vector<1x16x16xf32>, vector<1x16x16xf32>, vector<1x16x16xf32>, vector<1x16x16xf32> -> vector<4x16x16xf32>
    %82 = vector.extract_strided_slice %35 {offsets = [0, 0], sizes = [16, 16], strides = [1, 1]} : vector<16x64xf32> to vector<16x16xf32>
    %83 = vector.extract_strided_slice %35 {offsets = [0, 16], sizes = [16, 16], strides = [1, 1]} : vector<16x64xf32> to vector<16x16xf32>
    %84 = vector.extract_strided_slice %35 {offsets = [0, 32], sizes = [16, 16], strides = [1, 1]} : vector<16x64xf32> to vector<16x16xf32>
    %85 = vector.extract_strided_slice %35 {offsets = [0, 48], sizes = [16, 16], strides = [1, 1]} : vector<16x64xf32> to vector<16x16xf32>
    %86 = vector.shape_cast %82 : vector<16x16xf32> to vector<1x16x16xf32>
    %87 = vector.shape_cast %83 : vector<16x16xf32> to vector<1x16x16xf32>
    %88 = vector.shape_cast %84 : vector<16x16xf32> to vector<1x16x16xf32>
    %89 = vector.shape_cast %85 : vector<16x16xf32> to vector<1x16x16xf32>
    %90 = tpu.concatenate %86, %87, %88, %89 in 0 : vector<1x16x16xf32>, vector<1x16x16xf32>, vector<1x16x16xf32>, vector<1x16x16xf32> -> vector<4x16x16xf32>
    "tpu.trace_start"() <{level = 10 : i32, message = "hqd,hkd->hqk"}> : () -> ()
    %cst_21 = arith.constant dense<0.000000e+00> : vector<4x8x16xf32>
    %91 = tpu.matmul %72, %81, %cst_21 {dimension_numbers = #tpu.dot_dimension_numbers<[2], [2], [1], [1], [0, 0, 0, 1, 1, 1], [0], [0]>} : vector<4x8x16xf32>, vector<4x16x16xf32>, vector<4x8x16xf32> -> vector<4x8x16xf32>
    "tpu.trace_stop"() : () -> ()
    %92 = tpu.iota {dimensions = array<i32: 2>} : vector<1x1x16xi32>
    %c9_i32 = arith.constant 9 : i32
    %93 = vector.broadcast %c9_i32 : i32 to vector<1x1x16xi32>
    %94 = arith.cmpi slt, %92, %93 : vector<1x1x16xi32>
    %cst_22 = arith.constant -1.000000e+30 : f32
    %95 = vector.shape_cast %94 : vector<1x1x16xi1> to vector<1x1x16xi1>
    %96 = vector.broadcast %95 : vector<1x1x16xi1> to vector<4x8x16xi1>
    %97 = vector.broadcast %cst_22 : f32 to vector<4x8x16xf32>
    %98 = arith.select %96, %91, %97 : vector<4x8x16xi1>, vector<4x8x16xf32>
    %cst_23 = arith.constant dense<0xFF800000> : vector<4x8xf32>
    %99 = vector.multi_reduction <maximumf>, %98, %cst_23 [2] : vector<4x8x16xf32> to vector<4x8xf32>
    %100 = vector.shape_cast %99 : vector<4x8xf32> to vector<4x8x1xf32>
    %101 = vector.broadcast %100 : vector<4x8x1xf32> to vector<4x8x16xf32>
    %102 = arith.subf %98, %101 : vector<4x8x16xf32>
    %103 = math.exp %102 : vector<4x8x16xf32>
    %cst_24 = arith.constant dense<0.000000e+00> : vector<4x8xf32>
    %104 = vector.multi_reduction <add>, %103, %cst_24 [2] : vector<4x8x16xf32> to vector<4x8xf32>
    %105 = vector.shape_cast %104 : vector<4x8xf32> to vector<4x8x1xf32>
    %106 = tpu.reciprocal %105 {approx = true} : vector<4x8x1xf32> -> vector<4x8x1xf32>
    %107 = vector.broadcast %106 : vector<4x8x1xf32> to vector<4x8x16xf32>
    %108 = arith.mulf %103, %107 : vector<4x8x16xf32>
    "tpu.trace_start"() <{level = 10 : i32, message = "hqk,hkd->hqd"}> : () -> ()
    %cst_25 = arith.constant dense<0.000000e+00> : vector<4x8x16xf32>
    %109 = tpu.matmul %108, %90, %cst_25 {dimension_numbers = #tpu.dot_dimension_numbers<[2], [1], [1], [2], [0, 0, 0, 1, 1, 2], [0], [0]>} : vector<4x8x16xf32>, vector<4x16x16xf32>, vector<4x8x16xf32> -> vector<4x8x16xf32>
    "tpu.trace_stop"() : () -> ()
    %110 = vector.extract_strided_slice %109 {offsets = [0, 0, 0], sizes = [1, 8, 16], strides = [1, 1, 1]} : vector<4x8x16xf32> to vector<1x8x16xf32>
    %111 = vector.shape_cast %110 : vector<1x8x16xf32> to vector<8x16xf32>
    %112 = vector.extract_strided_slice %109 {offsets = [1, 0, 0], sizes = [1, 8, 16], strides = [1, 1, 1]} : vector<4x8x16xf32> to vector<1x8x16xf32>
    %113 = vector.shape_cast %112 : vector<1x8x16xf32> to vector<8x16xf32>
    %114 = vector.extract_strided_slice %109 {offsets = [2, 0, 0], sizes = [1, 8, 16], strides = [1, 1, 1]} : vector<4x8x16xf32> to vector<1x8x16xf32>
    %115 = vector.shape_cast %114 : vector<1x8x16xf32> to vector<8x16xf32>
    %116 = vector.extract_strided_slice %109 {offsets = [3, 0, 0], sizes = [1, 8, 16], strides = [1, 1, 1]} : vector<4x8x16xf32> to vector<1x8x16xf32>
    %117 = vector.shape_cast %116 : vector<1x8x16xf32> to vector<8x16xf32>
    %118 = tpu.concatenate %111, %113, %115, %117 in 1 : vector<8x16xf32>, vector<8x16xf32>, vector<8x16xf32>, vector<8x16xf32> -> vector<8x64xf32>
    %c88 = arith.constant 88 : index
    %c0_26 = arith.constant 0 : index
    %119 = vector.load %arg2[%c88, %c0_26] : memref<288x64xf32, #tpu.memory_space<vmem>>, vector<64x64xf32>
    %cst_27 = arith.constant dense<0.000000e+00> : vector<8x64xf32>
    %120 = tpu.matmul %118, %119, %cst_27 {dimension_numbers = #tpu.dot_dimension_numbers<[1], [0], [0], [1], [0, 0, 1, 1], [], []>} : vector<8x64xf32>, vector<64x64xf32>, vector<8x64xf32> -> vector<8x64xf32>
    %c284 = arith.constant 284 : index
    %c0_28 = arith.constant 0 : index
    %121 = vector.load %arg2[%c284, %c0_28] : memref<288x64xf32, #tpu.memory_space<vmem>>, vector<1x64xf32>
    %122 = vector.broadcast %121 : vector<1x64xf32> to vector<8x64xf32>
    %123 = arith.addf %120, %122 : vector<8x64xf32>
    %124 = arith.addf %1, %123 : vector<8x64xf32>
    %c282 = arith.constant 282 : index
    %c0_29 = arith.constant 0 : index
    %125 = vector.load %arg2[%c282, %c0_29] : memref<288x64xf32, #tpu.memory_space<vmem>>, vector<1x64xf32>
    %c283 = arith.constant 283 : index
    %c0_30 = arith.constant 0 : index
    %126 = vector.load %arg2[%c283, %c0_30] : memref<288x64xf32, #tpu.memory_space<vmem>>, vector<1x64xf32>
    %cst_31 = arith.constant dense<0.000000e+00> : vector<8xf32>
    %127 = vector.multi_reduction <add>, %124, %cst_31 [1] : vector<8x64xf32> to vector<8xf32>
    %128 = vector.shape_cast %127 : vector<8xf32> to vector<8x1xf32>
    %cst_32 = arith.constant 6.400000e+01 : f32
    %129 = vector.broadcast %cst_32 : f32 to vector<8x1xf32>
    %130 = arith.divf %128, %129 : vector<8x1xf32>
    %131 = vector.broadcast %130 : vector<8x1xf32> to vector<8x64xf32>
    %132 = arith.subf %124, %131 : vector<8x64xf32>
    %133 = arith.mulf %132, %132 : vector<8x64xf32>
    %cst_33 = arith.constant dense<0.000000e+00> : vector<8xf32>
    %134 = vector.multi_reduction <add>, %133, %cst_33 [1] : vector<8x64xf32> to vector<8xf32>
    %135 = vector.shape_cast %134 : vector<8xf32> to vector<8x1xf32>
    %cst_34 = arith.constant 6.400000e+01 : f32
    %136 = vector.broadcast %cst_34 : f32 to vector<8x1xf32>
    %137 = arith.divf %135, %136 : vector<8x1xf32>
    %cst_35 = arith.constant 9.99999996E-13 : f32
    %138 = vector.broadcast %cst_35 : f32 to vector<8x1xf32>
    %139 = arith.addf %137, %138 : vector<8x1xf32>
    %140 = math.rsqrt %139 : vector<8x1xf32>
    %141 = vector.broadcast %140 : vector<8x1xf32> to vector<8x64xf32>
    %142 = arith.mulf %132, %141 : vector<8x64xf32>
    %143 = vector.broadcast %125 : vector<1x64xf32> to vector<8x64xf32>
    %144 = arith.mulf %142, %143 : vector<8x64xf32>
    %145 = vector.broadcast %126 : vector<1x64xf32> to vector<8x64xf32>
    %146 = arith.addf %144, %145 : vector<8x64xf32>
    %c0_36 = arith.constant 0 : index
    %c0_37 = arith.constant 0 : index
    %147 = vector.load %arg3[%c0_36, %c0_37] : memref<144x128xf32, #tpu.memory_space<vmem>>, vector<64x128xf32>
    %cst_38 = arith.constant dense<0.000000e+00> : vector<8x128xf32>
    %148 = tpu.matmul %146, %147, %cst_38 {dimension_numbers = #tpu.dot_dimension_numbers<[1], [0], [0], [1], [0, 0, 1, 1], [], []>} : vector<8x64xf32>, vector<64x128xf32>, vector<8x128xf32> -> vector<8x128xf32>
    %c64_39 = arith.constant 64 : index
    %c0_40 = arith.constant 0 : index
    %149 = vector.load %arg3[%c64_39, %c0_40] : memref<144x128xf32, #tpu.memory_space<vmem>>, vector<1x128xf32>
    %150 = vector.broadcast %149 : vector<1x128xf32> to vector<8x128xf32>
    %151 = arith.addf %148, %150 : vector<8x128xf32>
    %cst_41 = arith.constant 5.000000e-01 : f32
    %152 = vector.broadcast %cst_41 : f32 to vector<8x128xf32>
    %153 = arith.mulf %152, %151 : vector<8x128xf32>
    %cst_42 = arith.constant 0.707106769 : f32
    %154 = vector.broadcast %cst_42 : f32 to vector<8x128xf32>
    %155 = arith.mulf %151, %154 : vector<8x128xf32>
    %156 = math.absf %155 : vector<8x128xf32>
    %cst_43 = arith.constant 0.327591091 : f32
    %157 = vector.broadcast %cst_43 : f32 to vector<8x128xf32>
    %158 = arith.mulf %157, %156 : vector<8x128xf32>
    %cst_44 = arith.constant 1.000000e+00 : f32
    %159 = vector.broadcast %cst_44 : f32 to vector<8x128xf32>
    %160 = arith.addf %159, %158 : vector<8x128xf32>
    %cst_45 = arith.constant 1.000000e+00 : f32
    %161 = vector.broadcast %cst_45 : f32 to vector<8x128xf32>
    %162 = arith.divf %161, %160 : vector<8x128xf32>
    %cst_46 = arith.constant 1.06140542 : f32
    %163 = vector.broadcast %cst_46 : f32 to vector<8x128xf32>
    %164 = arith.mulf %163, %162 : vector<8x128xf32>
    %cst_47 = arith.constant -1.45315206 : f32
    %165 = vector.broadcast %cst_47 : f32 to vector<8x128xf32>
    %166 = arith.addf %164, %165 : vector<8x128xf32>
    %167 = arith.mulf %166, %162 : vector<8x128xf32>
    %cst_48 = arith.constant 1.42141378 : f32
    %168 = vector.broadcast %cst_48 : f32 to vector<8x128xf32>
    %169 = arith.addf %167, %168 : vector<8x128xf32>
    %170 = arith.mulf %169, %162 : vector<8x128xf32>
    %cst_49 = arith.constant -0.284496725 : f32
    %171 = vector.broadcast %cst_49 : f32 to vector<8x128xf32>
    %172 = arith.addf %170, %171 : vector<8x128xf32>
    %173 = arith.mulf %172, %162 : vector<8x128xf32>
    %cst_50 = arith.constant 0.254829586 : f32
    %174 = vector.broadcast %cst_50 : f32 to vector<8x128xf32>
    %175 = arith.addf %173, %174 : vector<8x128xf32>
    %176 = arith.mulf %175, %162 : vector<8x128xf32>
    %cst_51 = arith.constant 0.000000e+00 : f32
    %177 = vector.broadcast %cst_51 : f32 to vector<8x128xf32>
    %178 = arith.subf %177, %156 : vector<8x128xf32>
    %179 = arith.mulf %178, %156 : vector<8x128xf32>
    %180 = math.exp %179 : vector<8x128xf32>
    %181 = arith.mulf %176, %180 : vector<8x128xf32>
    %cst_52 = arith.constant 1.000000e+00 : f32
    %182 = vector.broadcast %cst_52 : f32 to vector<8x128xf32>
    %183 = arith.subf %182, %181 : vector<8x128xf32>
    %cst_53 = arith.constant 0.000000e+00 : f32
    %184 = vector.broadcast %cst_53 : f32 to vector<8x128xf32>
    %185 = arith.cmpf olt, %155, %184 : vector<8x128xf32>
    %cst_54 = arith.constant 0.000000e+00 : f32
    %186 = vector.broadcast %cst_54 : f32 to vector<8x128xf32>
    %187 = arith.subf %186, %183 : vector<8x128xf32>
    %188 = arith.select %185, %187, %183 : vector<8x128xi1>, vector<8x128xf32>
    %cst_55 = arith.constant 1.000000e+00 : f32
    %189 = vector.broadcast %cst_55 : f32 to vector<8x128xf32>
    %190 = arith.addf %189, %188 : vector<8x128xf32>
    %191 = arith.mulf %153, %190 : vector<8x128xf32>
    %c152 = arith.constant 152 : index
    %c0_56 = arith.constant 0 : index
    %192 = vector.load %arg2[%c152, %c0_56] : memref<288x64xf32, #tpu.memory_space<vmem>>, vector<128x64xf32>
    %cst_57 = arith.constant dense<0.000000e+00> : vector<8x64xf32>
    %193 = tpu.matmul %191, %192, %cst_57 {dimension_numbers = #tpu.dot_dimension_numbers<[1], [0], [0], [1], [0, 0, 1, 1], [], []>} : vector<8x128xf32>, vector<128x64xf32>, vector<8x64xf32> -> vector<8x64xf32>
    %c285 = arith.constant 285 : index
    %c0_58 = arith.constant 0 : index
    %194 = vector.load %arg2[%c285, %c0_58] : memref<288x64xf32, #tpu.memory_space<vmem>>, vector<1x64xf32>
    %195 = vector.broadcast %194 : vector<1x64xf32> to vector<8x64xf32>
    %196 = arith.addf %193, %195 : vector<8x64xf32>
    %197 = arith.addf %124, %196 : vector<8x64xf32>
    %c72_59 = arith.constant 72 : index
    %c0_60 = arith.constant 0 : index
    %198 = vector.load %arg3[%c72_59, %c0_60] : memref<144x128xf32, #tpu.memory_space<vmem>>, vector<64x128xf32>
    %cst_61 = arith.constant dense<0.000000e+00> : vector<8x128xf32>
    %199 = tpu.matmul %197, %198, %cst_61 {dimension_numbers = #tpu.dot_dimension_numbers<[1], [0], [0], [1], [0, 0, 1, 1], [], []>} : vector<8x64xf32>, vector<64x128xf32>, vector<8x128xf32> -> vector<8x128xf32>
    %c136 = arith.constant 136 : index
    %c0_62 = arith.constant 0 : index
    %200 = vector.load %arg3[%c136, %c0_62] : memref<144x128xf32, #tpu.memory_space<vmem>>, vector<1x128xf32>
    %201 = vector.broadcast %200 : vector<1x128xf32> to vector<8x128xf32>
    %202 = arith.addf %199, %201 : vector<8x128xf32>
    %c0_63 = arith.constant 0 : index
    %c0_64 = arith.constant 0 : index
    %c0_65 = arith.constant 0 : index
    %203 = vector.load %arg5[%c0_63, %c0_64, %c0_65] : memref<1x8x128xf32, #tpu.memory_space<vmem>>, vector<1x8x128xf32>
    %204 = vector.shape_cast %203 : vector<1x8x128xf32> to vector<8x128xf32>
    %205 = vector.shape_cast %202 : vector<8x128xf32> to vector<1x8x128xf32>
    tpu.vector_store %arg5[%c0_63, %c0_64, %c0_65], %205 {strides = array<i32>} : memref<1x8x128xf32, #tpu.memory_space<vmem>>, vector<1x8x128xf32>,
    return
  }
  func.func @transform_0(%arg0: i32) -> (i32, i32, i32) {
    %c0_i32 = arith.constant 0 : i32
    %c0_i32_0 = arith.constant 0 : i32
    %c0_i32_1 = arith.constant 0 : i32
    return %arg0, %c0_i32, %c0_i32_0 : i32, i32, i32
  }
  func.func @transform_1(%arg0: i32) -> (i32, i32) {
    %c0_i32 = arith.constant 0 : i32
    %c0_i32_0 = arith.constant 0 : i32
    %c0_i32_1 = arith.constant 0 : i32
    return %c0_i32, %c0_i32_0 : i32, i32
  }
  func.func @transform_2(%arg0: i32) -> (i32, i32) {
    %c0_i32 = arith.constant 0 : i32
    %c0_i32_0 = arith.constant 0 : i32
    %c0_i32_1 = arith.constant 0 : i32
    return %c0_i32, %c0_i32_0 : i32, i32
  }
  func.func @transform_3(%arg0: i32) -> (i32, i32) {
    %c0_i32 = arith.constant 0 : i32
    %c0_i32_0 = arith.constant 0 : i32
    %c0_i32_1 = arith.constant 0 : i32
    return %c0_i32, %c0_i32_0 : i32, i32
  }
  func.func @transform_4(%arg0: i32) -> (i32, i32, i32) {
    %c0_i32 = arith.constant 0 : i32
    %c0_i32_0 = arith.constant 0 : i32
    %c0_i32_1 = arith.constant 0 : i32
    return %arg0, %c0_i32, %c0_i32_0 : i32, i32, i32
  }
}

</mosaic_0001>

<bundles_post_ra>
// kernel: tpu_custom_call.1
= control target key start
LH: loop header
LB: loop body
LE: loop exit
PB: predicated region body
PF: predicated region fallthrough
CT: control target
= control target key end

     0   :  { %9 = vsyncpa [#allocation3], 0  ;;  %s2671_s0 = inlined_call_operand.vmem [shape: f32[2,8,64], index: 0, kind: input, shape index: {}]   ;;  %s2672_s1 = inlined_call_operand.vmem [shape: f32[288,64], index: 1, kind: input, shape index: {}]   ;;  %s2673_s2 = inlined_call_operand.vmem [shape: f32[144,128], index: 2, kind: input, shape index: {}]   ;;  %s2674_s3 = inlined_call_operand.vmem [shape: f32[72,192], index: 3, kind: input, shape index: {}]   ;;  %s2675_s4 = inlined_call_operand.hbm [shape: f32[2,8,128], index: 4, kind: output, shape index: {}]  }
   0x1   :  { %11 = vsyncpa [#allocation3 + $0x1], 0  ;;  %s2202_s15 = smov 0   ;;  %s2204_s16 = smov 0  }
   0x2   :  { %s2206_s17 = smov 0   ;;  %s2208_s18 = smov 0  }
   0x3 LB: > { %s2223_s19 = sadd.s32 4294967295, %s2160_s18   ;;  %s1612_s20 = sadd.s32 4294967294, %s2160_s18   ;;  %s2160_s18 = sphi %s2208_s18, %s2683_s18   ;;  %s2156_s17 = sphi %s2206_s17, %s2682_s17   ;;  %s2152_s16 = sphi %s2204_s16, %s2681_s16   ;;  %s2148_s15 = sphi %s2202_s15, %s2680_s15  }
   0x4   : > { %s2227_s21 = sadd.s32 1, %s2160_s18   ;;  %s113_s22 = sadd.s32 1, %s2156_s17 }
   0x5   : > { %s110_s23 = ssub.s32 %s2160_s18, %s2227_s21  ;;  %p123_p0 = scmp.ne.s32.totalorder %s2156_s17, %s2152_s16 }
   0x6   : > { %p111_p1 = scmp.eq.s32.totalorder %s110_s23, 0  ;;  %p124_p2 = scmp.eq.s32.totalorder %s2223_s19, 1 }
   0x7   : > { %p129_p3 = scmp.ne.s32.totalorder %s2152_s16, %s2148_s15  ;;  %p130_p4 = scmp.eq.s32.totalorder %s1612_s20, 1 }
   0x8   : > { %s2238_s24 = scalar_select %p111_p1, %s2156_s17, %s113_s22  }
   0x9   : > { %p2240_p5 = por %p124_p2, %p123_p0  ;;  %p2244_p6 = por %p130_p4, %p129_p3 }
   0xa   : > { %p1615_p7 = scmp.ge.s32.totalorder %s2160_s18, 1  ;;  %p164_p8 = scmp.lt.s32.totalorder %s2160_s18, 3 }
   0xc   : > { %p165_p9 = pnand %p1615_p7, %p164_p8 }
   0xd   : > { %p189_p10 = scmp.lt.s32.totalorder (!%p165_p9), %s2223_s19, 1  ;;  %vm196_vm0 = vcmask (!%p165_p9), 523264   ;;  %v222_v7 = vld [vmem:[%s2674_s3 + $0x8] sm:$0xff] (!%p165_p9)  ;;  %v224_v8 = vld [vmem:[%s2674_s3 + $0x18] sm:$0xff] (!%p165_p9)  ;;  %v221_v10 = vld [vmem:[%s2674_s3] sm:$0xff] (!%p165_p9)  ;;  %v2162_v20 = vmov (!%p165_p9), 0.0   ;;  %v240_v43 = vlaneseq (!%p165_p9) }
   0xe   : > { %168 = sbr.rel (%p165_p9) target bundleno = 3161 (0xc59), region = 36  ;;  %v1867_v9 = vpack.c.bf16 (!%p165_p9), %v224_v8, %v222_v7  ;;  %v223_v11 = vld [vmem:[%s2674_s3 + $0x10] sm:$0xff] (!%p165_p9)  ;;  %v226_v13 = vld [vmem:[%s2674_s3 + $0x28] sm:$0xff] (!%p165_p9)  ;;  %v228_v14 = vld [vmem:[%s2674_s3 + $0x38] sm:$0xff] (!%p165_p9)  ;;  %317 = vmatprep.mubr.f32.mxu0 (!%p165_p9), %v2162_v20  ;;  %s2163_s6 = smov (!%p165_p9), 64   ;;  %v2164_v42 = vmov (!%p165_p9), 0.0|0.0  }
   0xf   : > { %v1869_v12 = vpack.c.bf16 (!%p165_p9), %v223_v11, %v221_v10  ;;  %v225_v15 = vld [vmem:[%s2674_s3 + $0x20] sm:$0xff] (!%p165_p9)  ;;  %v1871_v16 = vpack.c.bf16 (!%p165_p9), %v228_v14, %v226_v13  ;;  %v227_v17 = vld [vmem:[%s2674_s3 + $0x30] sm:$0xff] (!%p165_p9)  ;;  %v230_v18 = vld [vmem:[%s2674_s3 + $0x48] sm:$0xff] (!%p165_p9)  ;;  %1883 = vmatprep.subr.bf16.mxu1 (!%p165_p9), %v2164_v42  ;;  %v241_v44 = vshrl.u32 (!%p165_p9), %v240_v43, 7  ;;  %s2165_s20 = smov (!%p165_p9), 56   ;;  %s2166_s22 = smov (!%p165_p9), 120  }
  0x10   : > { %1868 = vmatprep.subr.bf16.mxu0 (!%p165_p9), %v1867_v9  ;;  %v232_v19 = vld [vmem:[%s2674_s3 + $0x58] sm:$0xff] (!%p165_p9)  ;;  %v1873_v21 = vpack.c.bf16 (!%p165_p9), %v227_v17, %v225_v15  ;;  %v229_v23 = vld [vmem:[%s2674_s3 + $0x40] sm:$0xff] (!%p165_p9)  ;;  %v231_v24 = vld [vmem:[%s2674_s3 + $0x50] sm:$0xff] (!%p165_p9)  ;;  %s2168_s29 = smov (!%p165_p9), 72   ;;  %vm339_vm1 = vcmask (!%p165_p9), 457728   ;;  %vm350_vm2 = vcmask (!%p165_p9), 64512  }
  0x11   : > { %1870 = vmatpush1.bf16.msra.mxu0 (!%p165_p9), %v1869_v12  ;;  %v1875_v22 = vpack.c.bf16 (!%p165_p9), %v232_v19, %v230_v18  ;;  %v234_v25 = vld [vmem:[%s2674_s3 + $0x68] sm:$0xff] (!%p165_p9)  ;;  %v236_v26 = vld [vmem:[%s2674_s3 + $0x78] sm:$0xff] (!%p165_p9)  ;;  %v1877_v27 = vpack.c.bf16 (!%p165_p9), %v231_v24, %v229_v23  ;;  %v233_v29 = vld [vmem:[%s2674_s3 + $0x60] sm:$0xff] (!%p165_p9)  ;;  %v242_v45 = vsub.s32 (!%p165_p9), 0, %v241_v44  ;;  %v246_v47 = vsub.s32 (!%p165_p9), 1, %v241_v44  ;;  %s2169_s30 = smov (!%p165_p9), 96  }
  0x12   : > { %1872 = vmatprep.subr.bf16.mxu0 (!%p165_p9), %v1871_v16  ;;  %v1879_v28 = vpack.c.bf16 (!%p165_p9), %v236_v26, %v234_v25  ;;  %v235_v30 = vld [vmem:[%s2674_s3 + $0x70] sm:$0xff] (!%p165_p9)  ;;  %v324_v32 = vld [vmem:[%s2672_s1 + $0x48] sm:$0xff] (!%p165_p9)  ;;  %v1618_v37 = vld [vmem:[%s2672_s1 + $0x118] ss:$0 sm:$0xff] (!%p165_p9)  ;;  %vm2171_vm3 = vmmov (!%p165_p9), 0   ;;  %s2172_s7 = smov (!%p165_p9), 80  }
  0x13   : > { %v1881_v31 = vpack.c.bf16 (!%p165_p9), %v235_v30, %v233_v29  ;;  %326 = vrot.lane.b32.xlu1 (!%p165_p9), %v324_v32, %s2163_s6  ;;  %v1619_v39 = vld [vmem:[%s2672_s1 + $0x119] ss:$0 sm:$0xff] (!%p165_p9)  ;;  %v1620_v46 = vld [vmem:[%s2674_s3 + $0x80] ss:$8 sm:$0x3] (!%p165_p9)  ;;  %v329_v53 = vld [vmem:[%s2672_s1 + $0x50] sm:$0xff] (!%p165_p9)  ;;  %1723 = vmatprep.mubr.msk.f32.mxu1 (!%p165_p9), %vm2171_vm3, %v2162_v20 }
  0x14   : > { %v243_v48 = vrot.slane (!%p165_p9), %v1620_v46, %v242_v45  ;;  %v247_v49 = vrot.slane (!%p165_p9), %v1620_v46, %v246_v47  ;;  %v355_v57 = vld [vmem:[%s2672_s1 + $0x18] sm:$0xff] (!%p165_p9)  ;;  %v356_v59 = vld [vmem:[%s2672_s1 + $0x20] sm:$0xff] (!%p165_p9)  ;;  %v375_v60 = vld [vmem:[%s2672_s1 + $0x28] sm:$0xff] (!%p165_p9)  ;;  %vm456_vm4 = vcmask (!%p165_p9), 130048   ;;  %s2175_s8 = smov (!%p165_p9), 48   ;;  %vm1131_vm7 = vcmask (!%p165_p9), 261120  }
  0x15   : > { %s190_s27 = scalar_select %p189_p10, %s2223_s19, 1  ;;  %1874 = vmatpush1.bf16.msra.mxu0 %v1873_v21  ;;  %v341_v9 = vld [vmem:[%s2672_s1 + $0x8] sm:$0xff]  ;;  %v330_v11 = vld [vmem:[%s2672_s1] sm:$0xff]  ;;  %v352_v13 = vld [vmem:[%s2672_s1 + $0x10] sm:$0xff]  ;;  %vm1133_vm8 = vcmask 392192  }
  0x16   : > { %1876 = vmatprep.subr.bf16.mxu0 %v1875_v22  ;;  %v397_v14 = vld [vmem:[%s2672_s1 + $0x38] sm:$0xff]  ;;  %v398_v23 = vld [vmem:[%s2672_s1 + $0x40] sm:$0xff]  ;;  %vm2386_vm5 = vmpackc.low %vm456_vm4, %vm456_vm4 }
  0x17   : > { %s1617_s28 = sshll.u32 %s190_s27, 3 }
  0x18   : > { %s192_s5 = scalar_lea.vmem %s2671_s0, %s1617_s28  ;;  %s2167_s28 = smov 8  }
  0x19   : > { %v2255_v0 = vld [vmem:[%s192_s5] sm:$0xff]  ;;  %1878 = vmatpush1.bf16.msra.mxu0 %v1877_v27  ;;  %s2170_s5 = smov 112  }
  0x1a   : > { %v197_v1 = vsel %vm196_vm0, %v2255_v0, 0.0  ;;  %1880 = vmatprep.subr.bf16.mxu0 %v1879_v28 }
  0x1b   : > { %198 = vadd.xlane.f32.xlu0 %v197_v1 }
  0x1d   : > { %1882 = vmatpush1.bf16.msra.mxu0 %v1881_v31 }
  0x1e   : > { %1899 = vmatprep.subr.bf16.mxu0 %v2164_v42 }
  0x85   : > { %v327_v55 = vpop.permute.xlu1 %326 }
  0xa8   : > { %v199_v2 = vpop.xlane.xlu0 %198 }
  0xa9   : > { %v201_v3 = vmul.f32 0.015625, %v199_v2 }
  0xab   : > { %v202_v4 = vsub.f32 %v2255_v0, %v201_v3 }
  0xad   : > { %v203_v5 = vmul.f32 %v202_v4, %v202_v4 }
  0xaf   : > { %v204_v6 = vsel %vm196_vm0, %v203_v5, 0.0 }
  0xb0   : > { %205 = vadd.xlane.f32.xlu0 %v204_v6 }
 0x13d   : > { %v206_v33 = vpop.xlane.xlu0 %205 }
 0x13e   : > { %v207_v34 = vmul.f32 0.015625, %v206_v33 }
 0x140   : > { %v208_v35 = vadd.f32 1e-12, %v207_v34 }
 0x142   : > { %2074 = vrsqrt.f32 %v208_v35 }
 0x14c   : > { %v2075_v36 = vpop.eup %2074 }
 0x14d   : > { %v210_v38 = vmul.f32 %v2075_v36, %v202_v4  ;;  %v376_v4 = vld [vmem:[%s2672_s1 + $0x30] sm:$0xff] }
 0x14f   : > { %v215_v40 = vmul.f32 %v1618_v37, %v210_v38 }
 0x151   : > { %v220_v41 = vadd.f32 %v1619_v39, %v215_v40 }
 0x153   : > { %1621 = vmatmul.mubr.msk.f32.vlgmr.msra.gmra.mrb[0].mxu0 %vm196_vm0, %v220_v41 }
 0x154   : > { %1751 = vmatprep.mubr.msk.f32.mxu0 %vm2171_vm3, %v2162_v20 }
 0x226   : > { %v319_v50 = vpop.f32.mrb[0].mxu0 }
 0x227   : > { %v2327_v51 = vadd.f32 %v319_v50, %v243_v48  ;;  %v321_v52 = vpop.f32.mrb[1].mxu0 }
 0x228   : > { %v322_v54 = vadd.f32 %v321_v52, %v247_v49 }
 0x229   : > { %336 = vrot.lane.b32.xlu0 %v2327_v51, %s2165_s20  ;;  %333 = vrot.lane.b32.xlu1 %v2327_v51, %s2166_s22  ;;  %v331_v15 = vmul.f32 %v330_v11, %v2327_v51 }
 0x22a   : > { %v1900_v56 = vpack.c.bf16 %v329_v53, %v322_v54  ;;  %v2337_v58 = vpack.i.bf16 %v329_v53, %v322_v54 }
 0x22c   : > { %1901 = vmatpush3.bf16.msra.mxu0 %v1900_v56 }
 0x22d   : > { %359 = vrot.lane.b32.xlu0 %v355_v57, %s2163_s6  ;;  %367 = vrot.lane.b32.xlu1 %v327_v55, %s2165_s20  ;;  %s186_s20 = sand.u32 1, %s2152_s16  }
 0x22e   : > { %1905 = vmatprep.subr.bf16.mxu0 %v2164_v42 }
 0x231   : > { %370 = vrot.lane.b32.xlu1 %v327_v55, %s2166_s22  ;;  %s1616_s22 = sshll.u32 %s186_s20, 3 }
 0x235   : > { %389 = vrot.lane.b32.xlu1 %v327_v55, %s2167_s28 }
 0x239   : > { %344 = vrot.lane.b32.xlu1 %v2327_v51, %s2168_s29 }
 0x23d   : > { %347 = vrot.lane.b32.xlu1 %v2327_v51, %s2167_s28  ;;  %s1648_s28 = sshll.u32 %s2223_s19, 7  ;;  %s2176_s19 = smov [#allocation2]  }
 0x23e   : > { %s2102_s10 = sshll.u32 %s2176_s19, 4  ;;  %s2103_s10 = int_to_ptr.vmem [resolvable:$false] %s2102_s10 }
 0x23f   : > { %s2104_s11 = scalar_lea.vmem %s2103_s10, 256 }
 0x241   : > { %392 = vrot.lane.b32.xlu1 %v327_v55, %s2168_s29  ;;  %s188_s29 = scalar_lea.vmem [#allocation2], %s1616_s22 }
 0x245   : > { %361 = vrot.lane.b32.xlu1 %v356_v59, %s2163_s6 }
 0x29b   : > { %v337_v61 = vpop.permute.xlu0 %336  ;;  %v334_v62 = vpop.permute.xlu1 %333 }
 0x29c   : > { %v340_v63 = vsel %vm339_vm1, %v334_v62, %v337_v61  ;;  %v373_v1 = vsel %vm339_vm1, %v337_v61, %v334_v62 }
 0x29d   : > { %v377_v2 = vmul.f32 %v375_v60, %v373_v1  ;;  %v342_v12 = vmul.f32 %v341_v9, %v340_v63 }
 0x29f   : > { %381 = vrot.lane.b32.xlu0 %v377_v2, %s2163_s6  ;;  %v368_v3 = vpop.permute.xlu1 %367  ;;  %v343_v19 = vadd.f32 %v342_v12, %v331_v15  ;;  %v360_v28 = vpop.permute.xlu0 %359 }
 0x2a0   : > { %v365_v32 = vmul.f32 %v360_v28, %v2327_v51 }
 0x2a3   : > { %v371_v5 = vpop.permute.xlu1 %370 }
 0x2a4   : > { %v374_v6 = vsel %vm339_vm1, %v368_v3, %v371_v5 }
 0x2a5   : > { %v378_v7 = vmul.f32 %v376_v4, %v374_v6  ;;  %v774_v4 = vand.u32 127, %v240_v43 }
 0x2a7   : > { %383 = vrot.lane.b32.xlu1 %v378_v7, %s2163_s6  ;;  %v390_v8 = vpop.permute.xlu1 %389  ;;  %vm775_vm6 = vcmp.lt.s32.totalorder %v774_v4, 9 }
 0x2ab   : > { %v345_v10 = vpop.permute.xlu1 %344 }
 0x2af   : > { %v348_v16 = vpop.permute.xlu1 %347 }
 0x2b0   : > { %v351_v17 = vsel %vm350_vm2, %v345_v10, %v348_v16  ;;  %v395_v18 = vsel %vm350_vm2, %v348_v16, %v345_v10 }
 0x2b1   : > { %v353_v21 = vmul.f32 %v352_v13, %v351_v17  ;;  %v399_v22 = vmul.f32 %v397_v14, %v395_v18 }
 0x2b3   : > { %v354_v24 = vadd.f32 %v353_v21, %v343_v19  ;;  %403 = vrot.lane.b32.xlu0 %v399_v22, %s2163_s6  ;;  %v393_v25 = vpop.permute.xlu1 %392 }
 0x2b4   : > { %v396_v26 = vsel %vm350_vm2, %v390_v8, %v393_v25 }
 0x2b5   : > { %v400_v27 = vmul.f32 %v398_v23, %v396_v26 }
 0x2b7   : > { %405 = vrot.lane.b32.xlu1 %v400_v27, %s2163_s6  ;;  %v362_v29 = vpop.permute.xlu1 %361 }
 0x2b8   : > { %v366_v33 = vmul.f32 %v362_v29, %v327_v55 }
 0x311   : > { %v382_v30 = vpop.permute.xlu0 %381 }
 0x312   : > { %v387_v35 = vadd.f32 %v382_v30, %v365_v32 }
 0x319   : > { %v384_v31 = vpop.permute.xlu1 %383 }
 0x31a   : > { %v388_v36 = vadd.f32 %v384_v31, %v366_v33 }
 0x325   : > { %v404_v34 = vpop.permute.xlu0 %403 }
 0x326   : > { %v409_v38 = vadd.f32 %v404_v34, %v387_v35 }
 0x329   : > { %v406_v37 = vpop.permute.xlu1 %405 }
 0x32a   : > { %v410_v39 = vadd.f32 %v406_v37, %v388_v36 }
 0x32c   : > { %v2029_v40 = vpack.i.bf16 %v410_v39, %v409_v38 }
 0x32e   : > { %2030 = vrot.lane.b32.xlu1 %v2029_v40, %s2169_s30  ;;  %2025 = vrot.lane.b32.xlu0 %v2029_v40, %s2170_s5 }
 0x332   : > { %2040 = vrot.lane.b32.xlu1 %v2029_v40, %s2163_s6  ;;  %2035 = vrot.lane.b32.xlu0 %v2029_v40, %s2172_s7 }
 0x3a0   : > { %v2031_v41 = vpop.permute.xlu1 %2030  ;;  %v2026_v44 = vpop.permute.xlu0 %2025 }
 0x3a1   : > { %2050 = vrot.lane.b32.xlu1 %v2031_v41, %s2163_s6  ;;  %2045 = vrot.lane.b32.xlu0 %v2026_v44, %s2163_s6 }
 0x3a4   : > { %v2041_v45 = vpop.permute.xlu1 %2040  ;;  %v2036_v46 = vpop.permute.xlu0 %2035 }
 0x3a5   : > { %v2043_v47 = vunpack.i.h.bf16 %v2041_v45  ;;  %v2042_v48 = vunpack.i.l.bf16 %v2041_v45  ;;  %2055 = vrot.lane.b32.xlu1 %v2036_v46, %s2163_s6  ;;  %412 = vrot.lane.b32.xlu0 %v354_v24, %s2170_s5  ;;  %s2174_s6 = smov 32  }
 0x3a7   : > { %v1884_v50 = vpack.c.bf16 %v2043_v47, %v2042_v48 }
 0x3a9   : > { %1886 = vmatpush3.bf16.xpose.msk.msra.mxu1 %vm2386_vm5, %v1884_v50  ;;  %416 = vrot.lane.b32.xlu1 %v354_v24, %s2172_s7 }
 0x3aa   : > { %1887 = vmatprep.subr.bf16.mxu1 %v2164_v42  ;;  %414 = vrot.lane.b32.xlu0 %v354_v24, %s2169_s30 }
 0x3b0   : > { %1724 = vmatmul.mubr.msk.f32.vlgmr.msra.gmra.mrb[0].mxu1 %vm456_vm4, %v354_v24 }
 0x3b1   : > { %1730 = vmatprep.mubr.msk.f32.mxu1 %vm2171_vm3, %v2162_v20 }
 0x413   : > { %v2046_v51 = vpop.permute.xlu0 %2045  ;;  %v2051_v55 = vpop.permute.xlu1 %2050 }
 0x414   : > { %v2048_v52 = vunpack.i.h.bf16 %v2046_v51  ;;  %v2047_v53 = vunpack.i.l.bf16 %v2046_v51  ;;  %v2053_v56 = vunpack.i.h.bf16 %v2051_v55  ;;  %v2052_v57 = vunpack.i.l.bf16 %v2051_v55 }
 0x416   : > { %v1888_v54 = vpack.c.bf16 %v2048_v52, %v2047_v53  ;;  %v1892_v59 = vpack.c.bf16 %v2053_v56, %v2052_v57 }
 0x417   : > { %v413_v60 = vpop.permute.xlu0 %412  ;;  %v2056_v61 = vpop.permute.xlu1 %2055 }
 0x418   : > { %1890 = vmatpush3.bf16.xpose.msk.msra.mxu1 %vm2386_vm5, %v1888_v54  ;;  %v2058_v62 = vunpack.i.h.bf16 %v2056_v61  ;;  %v2057_v63 = vunpack.i.l.bf16 %v2056_v61 }
 0x419   : > { %1891 = vmatprep.subr.bf16.mxu1 %v2164_v42 }
 0x41a   : > { %v1896_v1 = vpack.c.bf16 %v2058_v62, %v2057_v63 }
 0x41b   : > { %v417_v3 = vpop.permute.xlu1 %416 }
 0x41c   : > { %v415_v2 = vpop.permute.xlu0 %414 }
 0x41f   : > { %1731 = vmatmul.mubr.msk.f32.vlgmr.msra.gmra.mrb[2].mxu1 %vm456_vm4, %v413_v60 }
 0x420   : > { %1894 = vmatpush3.bf16.xpose.msk.msra.mxu1 %vm2386_vm5, %v1892_v59  ;;  %1737 = vmatprep.mubr.msk.f32.mxu1 %vm2171_vm3, %v2162_v20 }
 0x421   : > { %1895 = vmatprep.subr.bf16.mxu1 %v2164_v42 }
 0x427   : > { %1738 = vmatmul.mubr.msk.f32.vlgmr.msra.gmra.mrb[4].mxu1 %vm456_vm4, %v415_v2 }
 0x428   : > { %1898 = vmatpush3.bf16.xpose.msk.msra.mxu1 %vm2386_vm5, %v1896_v1  ;;  %1744 = vmatprep.mubr.msk.f32.mxu1 %vm2171_vm3, %v2162_v20 }
 0x429   : > { %1902 = vmatprep.subr.bf16.mxu1 %v2164_v42 }
 0x42f   : > { %1745 = vmatmul.mubr.msk.f32.vlgmr.msra.gmra.mrb[6].mxu1 %vm456_vm4, %v417_v3 }
 0x430   : > { %1758 = vmatprep.mubr.msk.f32.mxu1 %vm2171_vm3, %v2162_v20 }
 0x483   : > { %v529_v5 = vpop.f32.mrb[0].mxu1 }
 0x484   : > { %v778_v6 = vsel %vm775_vm6, %v529_v5, -1e+30  ;;  %v1725_v7 = vpop.f32.mrb[1].mxu1 }
 0x485   : > { %v782_v8 = vsel %vm456_vm4, %v778_v6, -inf  ;;  %v1136_v7 = vld [vmem:[%s2672_s1 + $0x60] sm:$0xff] }
 0x486   : > { %783 = vmax.xlane.f32.xlu0 %v782_v8  ;;  %v1137_v8 = vld [vmem:[%s2672_s1 + $0x68] sm:$0xff] }
 0x4f2   : > { %v609_v9 = vpop.f32.mrb[2].mxu1 }
 0x4f3   : > { %v779_v10 = vsel %vm775_vm6, %v609_v9, -1e+30  ;;  %v1732_v11 = vpop.f32.mrb[3].mxu1 }
 0x4f4   : > { %v785_v12 = vsel %vm456_vm4, %v779_v10, -inf }
 0x4f5   : > { %786 = vmax.xlane.f32.xlu1 %v785_v12  ;;  %v1139_v12 = vld [vmem:[%s2672_s1 + $0x78] sm:$0xff] }
 0x4fa   : > { %v689_v13 = vpop.f32.mrb[4].mxu1 }
 0x4fb   : > { %v780_v14 = vsel %vm775_vm6, %v689_v13, -1e+30  ;;  %v1739_v15 = vpop.f32.mrb[5].mxu1  ;;  %v1140_v13 = vld [vmem:[%s2672_s1 + $0x80] sm:$0xff] }
 0x4fc   : > { %v788_v43 = vsel %vm456_vm4, %v780_v14, -inf }
 0x4fd   : > { %789 = vmax.xlane.f32.xlu0 %v788_v43  ;;  %v1141_v43 = vld [vmem:[%s2672_s1 + $0x88] sm:$0xff] }
 0x502   : > { %v769_v16 = vpop.f32.mrb[6].mxu1 }
 0x503   : > { %v781_v17 = vsel %vm775_vm6, %v769_v16, -1e+30  ;;  %v1746_v18 = vpop.f32.mrb[7].mxu1  ;;  %v1142_v16 = vld [vmem:[%s2672_s1 + $0x90] sm:$0xff] }
 0x504   : > { %v791_v19 = vsel %vm456_vm4, %v781_v17, -inf  ;;  %v1921_v18 = vpack.c.bf16 %v1142_v16, %v1141_v43  ;;  %v1372_v16 = vld [vmem:[%s2672_s1 + $0xf8] sm:$0xff] }
 0x505   : > { %792 = vmax.xlane.f32.xlu0 %v791_v19 }
 0x506   : > { %2060 = vrot.lane.b32.xlu1 %v2337_v58, %s2170_s5 }
 0x513   : > { %v784_v21 = vpop.xlane.xlu0 %783 }
 0x514   : > { %v794_v22 = vsub.f32 %v778_v6, %v784_v21  ;;  %v1135_v6 = vld [vmem:[%s2672_s1 + $0x58] sm:$0xff] }
 0x515   : > { %v1912_v9 = vpack.c.bf16 %v1136_v7, %v1135_v6  ;;  %v1365_v6 = vld [vmem:[%s2672_s1 + $0xc0] sm:$0xff] }
 0x516   : > { %v798_v23 = vmul.f32 1.442695, %v794_v22 }
 0x518   : > { %2076 = vpow2.f32 %v798_v23 }
 0x522   : > { %v2077_v24 = vpop.eup %2076 }
 0x523   : > { %v806_v25 = vsel %vm456_vm4, %v2077_v24, 0.0 }
 0x52a   : > { %807 = vadd.xlane.f32.xlu1 %v806_v25 }
 0x582   : > { %v787_v26 = vpop.xlane.xlu1 %786 }
 0x583   : > { %v795_v27 = vsub.f32 %v779_v10, %v787_v26  ;;  %v1138_v10 = vld [vmem:[%s2672_s1 + $0x70] sm:$0xff] }
 0x584   : > { %v1915_v11 = vpack.c.bf16 %v1138_v10, %v1137_v8  ;;  %v1366_v8 = vld [vmem:[%s2672_s1 + $0xc8] sm:$0xff] }
 0x585   : > { %v800_v28 = vmul.f32 1.442695, %v795_v27 }
 0x586   : > { %v2061_v29 = vpop.permute.xlu1 %2060 }
 0x587   : > { %2078 = vpow2.f32 %v800_v28  ;;  %v2063_v30 = vunpack.i.h.bf16 %v2061_v29  ;;  %v2062_v31 = vunpack.i.l.bf16 %v2061_v29 }
 0x589   : > { %v1903_v32 = vpack.c.bf16 %v2063_v30, %v2062_v31  ;;  %v1638_v30 = vld [vmem:[%s2672_s1 + $0x11c] ss:$0 sm:$0xff] }
 0x58a   : > { %v790_v33 = vpop.xlane.xlu0 %789 }
 0x58b   : > { %v796_v34 = vsub.f32 %v780_v14, %v790_v33  ;;  %1904 = vmatpush3.bf16.msra.mxu1 %v1903_v32  ;;  %v1918_v14 = vpack.c.bf16 %v1140_v13, %v1139_v12  ;;  %v1369_v12 = vld [vmem:[%s2672_s1 + $0xe0] sm:$0xff] }
 0x58c   : > { %1908 = vmatprep.subr.bf16.mxu1 %v2164_v42 }
 0x58d   : > { %v802_v35 = vmul.f32 1.442695, %v796_v34 }
 0x58f   : > { %2080 = vpow2.f32 %v802_v35 }
 0x591   : > { %v2079_v36 = vpop.eup %2078 }
 0x592   : > { %v793_v37 = vpop.xlane.xlu0 %792  ;;  %v809_v38 = vsel %vm456_vm4, %v2079_v36, 0.0 }
 0x593   : > { %v797_v39 = vsub.f32 %v781_v17, %v793_v37  ;;  %810 = vadd.xlane.f32.xlu0 %v809_v38 }
 0x595   : > { %v804_v40 = vmul.f32 1.442695, %v797_v39 }
 0x597   : > { %2082 = vpow2.f32 %v804_v40 }
 0x599   : > { %v2081_v41 = vpop.eup %2080 }
 0x59a   : > { %v812_v44 = vsel %vm456_vm4, %v2081_v41, 0.0 }
 0x59b   : > { %813 = vadd.xlane.f32.xlu1 %v812_v44 }
 0x5a1   : > { %v2083_v45 = vpop.eup %2082 }
 0x5a2   : > { %v815_v46 = vsel %vm456_vm4, %v2083_v45, 0.0 }
 0x5a3   : > { %816 = vadd.xlane.f32.xlu0 %v815_v46  ;;  %v1250_v46 = vld [vmem:[%s2673_s2 + $0x18] sm:$0xff] }
 0x5ac   : > { %2070 = vrot.lane.b32.xlu1 %v2337_v58, %s2172_s7  ;;  %s2173_s7 = smov 16  }
 0x5b7   : > { %v808_v47 = vpop.xlane.xlu1 %807 }
 0x5b8   : > { %2084 = vrcp.f32 %v808_v47 }
 0x5b9   : > { %2065 = vrot.lane.b32.xlu0 %v2337_v58, %s2169_s30  ;;  %s1553_s30 = sshll.u32 %s188_s29, 4  ;;  %s2631_s30 = int_to_ptr.vmem [resolvable:$true] %s1553_s30 }
 0x5ba   : > { %s2098_s9 = scalar_lea.vmem %s2631_s30, 128  ;;  %p2105_p0 = scmp.lt.s32.totalorder %s2631_s30, %s2103_s10 }
 0x5bb   : > { %p2099_p11 = scmp.ne.s32.totalorder %s2631_s30, %s2098_s9  ;;  %p2106_p1 = scmp.lt.s32.totalorder %s2104_s11, %s2098_s9 }
 0x5bd   : > { %p2100_p12 = pnand %p2099_p11, %p2240_p5  ;;  %p2107_p2 = por %p2106_p1, %p2105_p0 }
 0x5bf   : > { %p2101_p13 = pneg %p2100_p12 }
 0x5c1   : > { %p2108_p3 = pnand %p2107_p2, %p2101_p13 }
 0x5c2   : > { %v2085_v48 = vpop.eup %2084 }
 0x5c3   : > { %v822_v49 = vmul.f32 %v2085_v48, %v2077_v24  ;;  %v1251_v48 = vld [vmem:[%s2673_s2 + $0x20] sm:$0xff] }
 0x5c5   : > { %1752 = vmatmul.mubr.msk.f32.vlgmr.msra.gmra.mrb[2].mxu0 %vm456_vm4, %v822_v49  ;;  %v1252_v49 = vld [vmem:[%s2673_s2 + $0x28] sm:$0xff] }
 0x5c6   : > { %1765 = vmatprep.mubr.msk.f32.mxu0 %vm2171_vm3, %v2162_v20 }
 0x620   : > { %v811_v50 = vpop.xlane.xlu0 %810 }
 0x621   : > { %2086 = vrcp.f32 %v811_v50  ;;  %v1930_v50 = vpack.c.bf16 %v1252_v49, %v1251_v48 }
 0x628   : > { %v814_v51 = vpop.xlane.xlu1 %813 }
 0x629   : > { %2088 = vrcp.f32 %v814_v51  ;;  %v1253_v51 = vld [vmem:[%s2673_s2 + $0x30] sm:$0xff] }
 0x62b   : > { %v2087_v52 = vpop.eup %2086 }
 0x62c   : > { %v823_v53 = vmul.f32 %v2087_v52, %v2079_v36  ;;  %v2071_v54 = vpop.permute.xlu1 %2070  ;;  %v1254_v52 = vld [vmem:[%s2673_s2 + $0x38] sm:$0xff] }
 0x62d   : > { %v2073_v55 = vunpack.i.h.bf16 %v2071_v54  ;;  %v2072_v56 = vunpack.i.l.bf16 %v2071_v54 }
 0x62e   : > { %1759 = vmatmul.mubr.msk.f32.vlgmr.msra.gmra.mrb[8].mxu1 %vm456_vm4, %v823_v53  ;;  %v1933_v53 = vpack.c.bf16 %v1254_v52, %v1253_v51 }
 0x62f   : > { %v1909_v57 = vpack.c.bf16 %v2073_v55, %v2072_v56  ;;  %1772 = vmatprep.mubr.msk.f32.mxu1 %vm2171_vm3, %v2162_v20 }
 0x630   : > { %v817_v58 = vpop.xlane.xlu0 %816 }
 0x631   : > { %2090 = vrcp.f32 %v817_v58  ;;  %1910 = vmatpush3.bf16.msra.mxu1 %v1909_v57  ;;  %v1640_v58 = vld [vmem:[%s2672_s1 + $0x11a] ss:$0 sm:$0xff] }
 0x632   : > { %1923 = vmatprep.subr.bf16.mxu1 %v2164_v42 }
 0x633   : > { %v2089_v62 = vpop.eup %2088 }
 0x634   : > { %v2066_v59 = vpop.permute.xlu0 %2065  ;;  %v824_v1 = vmul.f32 %v2089_v62, %v2081_v41  ;;  %v1247_v41 = vld [vmem:[%s2673_s2] sm:$0xff] }
 0x635   : > { %v2068_v60 = vunpack.i.h.bf16 %v2066_v59  ;;  %v2067_v61 = vunpack.i.l.bf16 %v2066_v59 }
 0x637   : > { %v1906_v63 = vpack.c.bf16 %v2068_v60, %v2067_v61  ;;  %v1641_v60 = vld [vmem:[%s2672_s1 + $0x11b] ss:$0 sm:$0xff] }
 0x639   : > { %1907 = vmatpush3.bf16.msra.mxu0 %v1906_v63  ;;  %v1360_v63 = vld [vmem:[%s2672_s1 + $0x98] sm:$0xff] }
 0x63a   : > { %1911 = vmatprep.subr.bf16.mxu0 %v2164_v42 }
 0x63b   : > { %v2091_v2 = vpop.eup %2090 }
 0x63c   : > { %v825_v3 = vmul.f32 %v2091_v2, %v2083_v45  ;;  %1766 = vmatmul.mubr.msk.f32.vlgmr.msra.gmra.mrb[4].mxu0 %vm456_vm4, %v824_v1  ;;  %v1249_v45 = vld [vmem:[%s2673_s2 + $0x10] sm:$0xff]  ;;  %v1361_v1 = vld [vmem:[%s2672_s1 + $0xa0] sm:$0xff] }
 0x63d   : > { %1791 = vmatprep.mubr.msk.f32.mxu0 %vm2171_vm3, %v2162_v20  ;;  %1913 = vmatpush3.bf16.msra.mxu0 %v1912_v9  ;;  %v1927_v47 = vpack.c.bf16 %v1250_v46, %v1249_v45  ;;  %v1936_v2 = vpack.c.bf16 %v1361_v1, %v1360_v63  ;;  %v1367_v9 = vld [vmem:[%s2672_s1 + $0xd0] sm:$0xff]  ;;  %v1459_v63 = vld [vmem:[%s2673_s2 + $0x80] sm:$0xff] }
 0x63e   : > { %1773 = vmatmul.mubr.msk.f32.vlgmr.msra.gmra.mrb[10].mxu1 %vm456_vm4, %v825_v3  ;;  %1914 = vmatprep.subr.bf16.mxu0 %v2164_v42  ;;  %v1362_v3 = vld [vmem:[%s2672_s1 + $0xa8] sm:$0xff]  ;;  %v1945_v10 = vpack.c.bf16 %v1367_v9, %v1366_v8 }
 0x63f   : > { %1810 = vmatprep.mubr.msk.f32.mxu1 %vm2171_vm3, %v2162_v20 }
 0x641   : > { %1916 = vmatpush3.bf16.msra.mxu0 %v1915_v11  ;;  %v1368_v11 = vld [vmem:[%s2672_s1 + $0xd8] sm:$0xff] }
 0x642   : > { %1917 = vmatprep.subr.bf16.mxu0 %v2164_v42  ;;  %v1948_v13 = vpack.c.bf16 %v1369_v12, %v1368_v11 }
 0x645   : > { %1919 = vmatpush3.bf16.msra.mxu0 %v1918_v14  ;;  %v1370_v14 = vld [vmem:[%s2672_s1 + $0xe8] sm:$0xff] }
 0x646   : > { %1920 = vmatprep.subr.bf16.mxu0 %v2164_v42 }
 0x649   : > { %1922 = vmatpush3.bf16.msra.mxu0 %v1921_v18 }
 0x64a   : > { %1935 = vmatprep.subr.bf16.mxu0 %v2164_v42 }
 0x698   : > { %v895_v4 = vpop.f32.mrb[2].mxu0 }
 0x699   : > { %v1753_v5 = vpop.f32.mrb[3].mxu0 }
 0x69a   : > { %v1364_v5 = vld [vmem:[%s2672_s1 + $0xb8] sm:$0xff] }
 0x69b   : > { %v1942_v7 = vpack.c.bf16 %v1365_v6, %v1364_v5  ;;  %v1645_v6 = vld [vmem:[%s2673_s2 + $0x88] ss:$0 sm:$0xff] }
 0x701   : > { %v968_v15 = vpop.f32.mrb[8].mxu1 }
 0x702   : > { %1119 = vrot.lane.b32.xlu1 %v968_v15, %s2173_s7  ;;  %v1760_v17 = vpop.f32.mrb[9].mxu1  ;;  %v1371_v15 = vld [vmem:[%s2672_s1 + $0xf0] sm:$0xff] }
 0x703   : > { %v1951_v43 = vpack.c.bf16 %v1371_v15, %v1370_v14  ;;  %v1373_v17 = vld [vmem:[%s2672_s1 + $0x100] sm:$0xff] }
 0x704   : > { %v1954_v18 = vpack.c.bf16 %v1373_v17, %v1372_v16 }
 0x70f   : > { %v1041_v19 = vpop.f32.mrb[4].mxu0 }
 0x710   : > { %1123 = vrot.lane.b32.xlu0 %v1041_v19, %s2174_s6  ;;  %v1767_v21 = vpop.f32.mrb[5].mxu0  ;;  %v1374_v19 = vld [vmem:[%s2672_s1 + $0x108] sm:$0xff]  ;;  %s2629_s6 = scalar_lea.hbm %s2675_s4, %s1648_s28 }
 0x711   : > { %v1114_v22 = vpop.f32.mrb[10].mxu1  ;;  %v1375_v21 = vld [vmem:[%s2672_s1 + $0x110] sm:$0xff] }
 0x712   : > { %1127 = vrot.lane.b32.xlu1 %v1114_v22, %s2175_s8  ;;  %v1774_v23 = vpop.f32.mrb[11].mxu1  ;;  %v1957_v22 = vpack.c.bf16 %v1375_v21, %v1374_v19  ;;  %s1540_s8 = scalar_lea.sflag [#allocation3], %s186_s20 }
 0x713   : > { %v1452_v23 = vld [vmem:[%s2673_s2 + $0x48] sm:$0xff] }
 0x774   : > { %v1120_v24 = vpop.permute.xlu1 %1119 }
 0x775   : > { %v1130_v25 = vsel %vm456_vm4, %v895_v4, %v1120_v24  ;;  %v1453_v24 = vld [vmem:[%s2673_s2 + $0x50] sm:$0xff] }
 0x782   : > { %v1124_v26 = vpop.permute.xlu0 %1123 }
 0x783   : > { %v1132_v27 = vsel %vm1131_vm7, %v1130_v25, %v1124_v26  ;;  %v1454_v25 = vld [vmem:[%s2673_s2 + $0x58] sm:$0xff]  ;;  %v1960_v26 = vpack.c.bf16 %v1453_v24, %v1452_v23 }
 0x784   : > { %v1128_v28 = vpop.permute.xlu1 %1127 }
 0x785   : > { %v1134_v29 = vsel %vm1133_vm8, %v1132_v27, %v1128_v28  ;;  %v1455_v27 = vld [vmem:[%s2673_s2 + $0x60] sm:$0xff] }
 0x786   : > { %1792 = vmatmul.mubr.msk.f32.vlgmr.msra.gmra.mrb[6].mxu0 %vm196_vm0, %v1134_v29  ;;  %v1963_v28 = vpack.c.bf16 %v1455_v27, %v1454_v25  ;;  %v1456_v29 = vld [vmem:[%s2673_s2 + $0x68] sm:$0xff] }
 0x787   : > { %1845 = vmatprep.mubr.msk.f32.mxu0 %vm2171_vm3, %v2162_v20  ;;  %1937 = vmatpush3.bf16.msra.mxu0 %v1936_v2  ;;  %v1644_v2 = vld [vmem:[%s2672_s1 + $0x11d] ss:$0 sm:$0xff] }
 0x788   : > { %1938 = vmatprep.subr.bf16.mxu0 %v2164_v42 }
 0x859   : > { %v1217_v31 = vpop.f32.mrb[6].mxu0 }
 0x85a   : > { %v1218_v32 = vadd.f32 %v1638_v30, %v1217_v31  ;;  %v1793_v33 = vpop.f32.mrb[7].mxu0  ;;  %v1457_v30 = vld [vmem:[%s2673_s2 + $0x70] sm:$0xff] }
 0x85b   : > { %v1966_v31 = vpack.c.bf16 %v1457_v30, %v1456_v29 }
 0x85c   : > { %v2488_v34 = vadd.f32 %v1218_v32, %v2255_v0  ;;  %v1248_v0 = vld [vmem:[%s2673_s2 + $0x8] sm:$0xff]  ;;  %v1642_v32 = vld [vmem:[%s2673_s2 + $0x40] ss:$0 sm:$0xff] }
 0x85d   : > { %v1924_v44 = vpack.c.bf16 %v1248_v0, %v1247_v41 }
 0x85e   : > { %v1224_v35 = vsel %vm196_vm0, %v2488_v34, 0.0 }
 0x85f   : > { %1225 = vadd.xlane.f32.xlu0 %v1224_v35  ;;  %1925 = vmatpush3.bf16.msra.mxu1 %v1924_v44 }
 0x860   : > { %1926 = vmatprep.subr.bf16.mxu1 %v2164_v42 }
 0x863   : > { %1928 = vmatpush3.bf16.msra.mxu1 %v1927_v47 }
 0x864   : > { %1929 = vmatprep.subr.bf16.mxu1 %v2164_v42 }
 0x867   : > { %1931 = vmatpush3.bf16.msra.mxu1 %v1930_v50 }
 0x868   : > { %1932 = vmatprep.subr.bf16.mxu1 %v2164_v42 }
 0x86b   : > { %1934 = vmatpush3.bf16.msra.mxu1 %v1933_v53 }
 0x86c   : > { %1959 = vmatprep.subr.bf16.mxu1 %v2164_v42 }
 0x8ec   : > { %v1226_v36 = vpop.xlane.xlu0 %1225 }
 0x8ed   : > { %v1227_v37 = vmul.f32 0.015625, %v1226_v36 }
 0x8ef   : > { %v1228_v38 = vsub.f32 %v2488_v34, %v1227_v37 }
 0x8f1   : > { %v1229_v39 = vmul.f32 %v1228_v38, %v1228_v38 }
 0x8f3   : > { %v1230_v40 = vsel %vm196_vm0, %v1229_v39, 0.0 }
 0x8f4   : > { %1231 = vadd.xlane.f32.xlu1 %v1230_v40 }
 0x981   : > { %v1232_v54 = vpop.xlane.xlu1 %1231 }
 0x982   : > { %v1233_v55 = vmul.f32 0.015625, %v1232_v54 }
 0x984   : > { %v1234_v56 = vadd.f32 1e-12, %v1233_v55 }
 0x986   : > { %2092 = vrsqrt.f32 %v1234_v56 }
 0x990   : > { %v2093_v57 = vpop.eup %2092 }
 0x991   : > { %v1236_v59 = vmul.f32 %v2093_v57, %v1228_v38 }
 0x993   : > { %v1241_v61 = vmul.f32 %v1640_v58, %v1236_v59 }
 0x995   : > { %v1246_v62 = vadd.f32 %v1641_v60, %v1241_v61 }
 0x997   : > { %1811 = vmatmul.mubr.msk.f32.vlgmr.msra.gmra.mrb[12].mxu1 %vm196_vm0, %v1246_v62  ;;  %v1458_v62 = vld [vmem:[%s2673_s2 + $0x78] sm:$0xff] }
 0x998   : > { %1864 = vmatprep.mubr.msk.f32.mxu1 %vm2171_vm3, %v2162_v20  ;;  %v1363_v20 = vld [vmem:[%s2672_s1 + $0xb0] sm:$0xff]  ;;  %1961 = vmatpush3.bf16.msra.mxu1 %v1960_v26  ;;  %v1969_v1 = vpack.c.bf16 %v1459_v63, %v1458_v62 }
 0x999   : > { %v1939_v4 = vpack.c.bf16 %v1363_v20, %v1362_v3  ;;  %1962 = vmatprep.subr.bf16.mxu1 %v2164_v42 }
 0x99b   : > { %1940 = vmatpush3.bf16.msra.mxu0 %v1939_v4 }
 0x99c   : > { %1941 = vmatprep.subr.bf16.mxu0 %v2164_v42  ;;  %1964 = vmatpush3.bf16.msra.mxu1 %v1963_v28 }
 0x99d   : > { %1965 = vmatprep.subr.bf16.mxu1 %v2164_v42 }
 0x99f   : > { %1943 = vmatpush3.bf16.msra.mxu0 %v1942_v7 }
 0x9a0   : > { %1944 = vmatprep.subr.bf16.mxu0 %v2164_v42  ;;  %1967 = vmatpush3.bf16.msra.mxu1 %v1966_v31 }
 0x9a1   : > { %1968 = vmatprep.subr.bf16.mxu1 %v2164_v42 }
 0x9a3   : > { %1946 = vmatpush3.bf16.msra.mxu0 %v1945_v10 }
 0x9a4   : > { %1947 = vmatprep.subr.bf16.mxu0 %v2164_v42  ;;  %1970 = vmatpush3.bf16.msra.mxu1 %v1969_v1 }
 0x9a7   : > { %1949 = vmatpush3.bf16.msra.mxu0 %v1948_v13 }
 0x9a8   : > { %1950 = vmatprep.subr.bf16.mxu0 %v2164_v42 }
 0x9ab   : > { %1952 = vmatpush3.bf16.msra.mxu0 %v1951_v43 }
 0x9ac   : > { %1953 = vmatprep.subr.bf16.mxu0 %v2164_v42 }
 0x9af   : > { %1955 = vmatpush3.bf16.msra.mxu0 %v1954_v18 }
 0x9b0   : > { %1956 = vmatprep.subr.bf16.mxu0 %v2164_v42 }
 0x9b3   : > { %1958 = vmatpush3.bf16.msra.mxu0 %v1957_v22 }
 0xa6a   : > { %v1329_v33 = vpop.f32.mrb[12].mxu1 }
 0xa6b   : > { %v1330_v35 = vadd.f32 %v1642_v32, %v1329_v33  ;;  %v1812_v36 = vpop.f32.mrb[13].mxu1 }
 0xa6d   : > { %v1334_v37 = vmul.f32 0.70710677, %v1330_v35  ;;  %v1333_v59 = vmul.f32 0.5, %v1330_v35 }
 0xa6f   : > { %v1335_v38 = vand.u32 2147483647, %v1334_v37  ;;  %vm1355_vm9 = vcmp.lt.f32.partialorder %v1334_v37, 0.0 }
 0xa71   : > { %v1336_v39 = vmul.f32 0.3275911, %v1335_v38  ;;  %v1349_v41 = vsub.f32 0.0, %v1335_v38 }
 0xa73   : > { %v1337_v40 = vadd.f32 1.0, %v1336_v39  ;;  %v1350_v44 = vmul.f32 %v1349_v41, %v1335_v38 }
 0xa75   : > { %2094 = vrcp.f32 %v1337_v40  ;;  %v1351_v47 = vmul.f32 1.442695, %v1350_v44 }
 0xa77   : > { %2096 = vpow2.f32 %v1351_v47 }
 0xa7f   : > { %v2095_v0 = vpop.eup %2094 }
 0xa80   : > { %v1340_v45 = vmul.f32 1.0614054, %v2095_v0 }
 0xa81   : > { %v2097_v54 = vpop.eup %2096 }
 0xa82   : > { %v1341_v46 = vadd.f32 -1.4531521, %v1340_v45 }
 0xa84   : > { %v1342_v48 = vmul.f32 %v2095_v0, %v1341_v46 }
 0xa86   : > { %v1343_v42 = vadd.f32 1.4214138, %v1342_v48 }
 0xa88   : > { %v1344_v49 = vmul.f32 %v2095_v0, %v1343_v42 }
 0xa8a   : > { %v1345_v50 = vadd.f32 -0.28449672, %v1344_v49 }
 0xa8c   : > { %v1346_v51 = vmul.f32 %v2095_v0, %v1345_v50 }
 0xa8e   : > { %v1347_v52 = vadd.f32 0.2548296, %v1346_v51 }
 0xa90   : > { %v1348_v53 = vmul.f32 %v2095_v0, %v1347_v52 }
 0xa92   : > { %v1353_v55 = vmul.f32 %v2097_v54, %v1348_v53 }
 0xa94   : > { %v1354_v56 = vsub.f32 1.0, %v1353_v55 }
 0xa96   : > { %v1356_v57 = vsub.f32 0.0, %v1354_v56 }
 0xa98   : > { %v1357_v58 = vsel %vm1355_vm9, %v1356_v57, %v1354_v56 }
 0xa99   : > { %v1358_v60 = vadd.f32 1.0, %v1357_v58 }
 0xa9b   : > { %v1359_v61 = vmul.f32 %v1358_v60, %v1333_v59 }
 0xa9d   : > { %1846 = vmatmul.mubr.f32.vlgmr.msra.gmra.mrb[8].mxu0 %v1359_v61 }
 0xb70   : > { %v1447_v3 = vpop.f32.mrb[8].mxu0 }
 0xb71   : > { %v1448_v20 = vadd.f32 %v1644_v2, %v1447_v3  ;;  %v1847_v4 = vpop.f32.mrb[9].mxu0 }
 0xb73   : > { %v1451_v5 = vadd.f32 %v1448_v20, %v2488_v34 }
 0xb75   : > { %1865 = vmatmul.mubr.msk.f32.vlgmr.msra.gmra.mrb[14].mxu1 %vm196_vm0, %v1451_v5 }
 0xc48   : > { %v1534_v7 = vpop.f32.mrb[14].mxu1 }
 0xc49   : > { %v1535_v8 = vadd.f32 %v1645_v6, %v1534_v7  ;;  %v1866_v9 = vpop.f32.mrb[15].mxu1 }
 0xc4b   : > { %1538 = vst [vmem:[%s188_s29] sm:$0xff] %v1535_v8 }
 0xc4c   : > { %2111 = shalt.err (!%p2108_p3)
}
 0xc4d   : > { %s2112_s12 = scalar_lea.hbm %s2629_s6, 128  ;;  %s2116_s20 = scalar_lea.hbm %s2675_s4, 256 }
 0xc4e   : > { %p2113_p4 = scmp.ne.s32.totalorder %s2629_s6, %s2112_s12  ;;  %p2117_p9 = scmp.lt.u32.totalorder %s2629_s6, %s2675_s4 }
 0xc4f   : > { %p2118_p10 = scmp.lt.u32.totalorder %s2116_s20, %s2112_s12  ;;  %p2120_p12 = scmp.lt.u32.totalorder %s2112_s12, %s2629_s6 }
 0xc50   : > { %p2114_p7 = pnand %p2113_p4, %p2240_p5 }
 0xc51   : > { %p2119_p11 = por %p2118_p10, %p2117_p9 }
 0xc52   : > { %p2115_p8 = pneg %p2114_p7 }
 0xc53   : > { %p2121_p13 = por %p2120_p12, %p2119_p11 }
 0xc55   : > { %p2122_p0 = pnand %p2121_p13, %p2115_p8 }
 0xc57   : > { %2125 = shalt.err (!%p2122_p0)
}
 0xc58   : > { %1971 = dma.vmem_to_hbm [thread:$0]  (%p2240_p5), %s2631_s30, 128, %s2629_s6, %s1540_s8  }
 0xc59 PF: > { %p1977_p1 = scmp.ge.s32.totalorder %s2160_s18, 2  ;;  %s1565_s27 = sand.u32 1, %s2148_s15  }
 0xc5a   : > { %s1566_s28 = scalar_lea.sflag [#allocation3], %s1565_s27 }
 0xc5b   : > { %p1974_p2 = pnand %p1977_p1, %p2244_p6 }
 0xc5d   : > { %2143 = dma.done.wait (!%p1974_p2), %s1566_s28, 128  }
 0xc5e   : > { %2145 = vsyncadd (!%p1974_p2), %s1566_s28, 4294967168  ;;  %p14_p3 = scmp.ge.s32.totalorder %s2227_s21, 4   ;;  %s2680_s15 = smov %s2152_s16 }
 0xc5f   : > { %s2681_s16 = smov %s2156_s17  ;;  %s2682_s17 = smov %s2238_s24 }
 0xc60   : > { %s2683_s18 = smov %s2227_s21  ;;  %16 = sbr.rel (!%p14_p3) target bundleno = 3 (0x3), region = 72 }
 0xc67   :  { %1571 = vsyncpa [#allocation3], 1 }
 0xc68   :  { %1573 = vsyncpa [#allocation3 + $0x1], 1 }

</bundles_post_ra>
